<compile_context>
chip_gen: v6e
topology: v6e:2x2x1
jax: 0.10.0
libtpu: 0.0.40
codegen_flags: <defaults>
</compile_context>

<pallas_src>
import jax
import jax.numpy as jnp
import numpy as np
from jax import lax
from jax.experimental import pallas as pl
from jax.experimental.pallas import tpu as pltpu

# ---------------- static model config (mirrors the PyTorch __init__) ----------
K = 3              # kernel_size
PAD = 1            # pad_size
POOL_STRIDE = 2    # pool_stride
NUMS_BLOCK = 2     # nums_block
EMBED = 32         # embed size
N_VOCAB = 50       # n_vocab
NUM_CLASSES = 4    # num_classes
NUM_FILTERS = 32   # nums_filters
BATCH = 2
SEQ = 16

CH = max(EMBED, NUM_FILTERS)        # channel width of the padded VMEM scratch
SLAB_W = 128                        # lane width of the packed weight slab


def _pool_out(L):                   # PyTorch MaxPool1d floor mode
    return (L + 2 * PAD - K) // POOL_STRIDE + 1


def _align8(n):
    return -(-n // 8) * 8


def _seq_lens():
    ls = [SEQ]
    for _ in range(NUMS_BLOCK):
        ls.append(_pool_out(ls[-1]))
    return ls


SEQ_LENS = _seq_lens()              # [16, 8, 4]
R0 = BATCH * (SEQ + 2 * PAD)        # 36 rows in the flat padded scratch


def _slab_layout():
    """Static row offsets of every piece inside the packed (rows, 128) slab."""
    offs, r = {}, 0

    def add(name, rows):
        nonlocal r
        offs[name] = r
        r = _align8(r + rows)

    add('rw', K * EMBED); add('rb', 1)          # region conv (im2col taps)
    add('cw', K * NUM_FILTERS); add('cb', 1)    # shared PreActConv
    add('bw', K * NUM_FILTERS); add('bb', 1)    # shared ConvBlock PreActConv
    add('dw', NUM_FILTERS); add('db', 1)        # dense head
    for blk in range(NUMS_BLOCK):               # maxpool selection matrices
        add(f'sel{blk}', BATCH * (SEQ_LENS[blk + 1] + 2 * PAD))
    add('emb', N_VOCAB)                         # embedding table
    return offs, r


SLAB_OFFS, SLAB_ROWS = _slab_layout()


# ---------------- the Pallas kernel -------------------------------------------
def dpcnn_kernel(tok_ref, slab_ref, out_ref, xpad_ref):
    """Whole DPCNN (embedding lookup included) in one kernel invocation.

    tok_ref : (R0, 1) int32   padded token ids, -1 at halo rows
    slab_ref: (SLAB_ROWS, 128) packed weights / selection matrices / emb table
    xpad_ref: (R0, CH)        flat padded activation scratch; batch bi's body
                              lives at rows [bi*(L+2)+1, bi*(L+2)+1+L)
    """
    off = SLAB_OFFS
    F = NUM_FILTERS

    # hoisted constants (written only when the halo value must change)
    zero2 = jnp.zeros((2, CH), jnp.float32)
    neg_inf1 = jnp.full((1, CH), -jnp.inf, jnp.float32)

    # ---- hoisted weight loads (each piece read from the slab exactly once) ----
    def load_conv_w(name_w, name_b, cin):
        wo = off[name_w]
        taps = [slab_ref[wo + kk * cin: wo + (kk + 1) * cin, 0:F]
                for kk in range(K)]
        bias = slab_ref[off[name_b]:off[name_b] + 1, 0:F]
        return taps, bias

    rw_taps, rb_v = load_conv_w('rw', 'rb', EMBED)
    cw_taps, cb_v = load_conv_w('cw', 'cb', F)
    bw_taps, bb_v = load_conv_w('bw', 'bb', F)
    dw_v = slab_ref[off['dw']:off['dw'] + F, 0:NUM_CLASSES]
    db_v = slab_ref[off['db']:off['db'] + 1, 0:NUM_CLASSES]
    emb_tbl = slab_ref[off['emb']:off['emb'] + N_VOCAB, 0:EMBED]

    # ---- helpers over the flat padded layout ----------------------------------
    def conv_layer(L, cin, taps_w, bias):
        """K-tap conv over the whole flat padded buffer: K accumulated MXU
        dots (no im2col concat, no per-batch loop).  Output is in 'y layout':
        row bi*(L+2)+l is output position l of batch bi (inter-batch rows are
        garbage and never read)."""
        R = BATCH * (L + 2 * PAD)
        y = bias
        for kk in range(K):
            y = y + jnp.dot(xpad_ref[kk:kk + R - 2, 0:cin], taps_w[kk],
                            preferred_element_type=jnp.float32)
        return y                                            # (R-2, F)

    def store_relu_body(L, x):
        """scratch <- relu(x) at body rows; refresh the 2 inter-batch halo rows
        the full-width store just clobbered (outer halos stay zero)."""
        R = BATCH * (L + 2 * PAD)
        xpad_ref[1:R - 1, 0:CH] = jnp.maximum(x, 0.0)
        for bi in range(1, BATCH):                          # static, B == 2
            r = bi * (L + 2 * PAD)
            xpad_ref[r - 1:r + 1, 0:CH] = zero2

    def store_for_pool(L, x):
        """scratch <- x at body rows; only the LEFT halo of each batch is read
        by a selected pooling window, so only those rows get -inf."""
        R = BATCH * (L + 2 * PAD)
        xpad_ref[1:R - 1, 0:CH] = x
        for bi in range(BATCH):
            r = bi * (L + 2 * PAD)
            xpad_ref[r:r + 1, 0:CH] = neg_inf1

    def maxpool(L, blk):
        """MaxPool1d(K, 2, 1): full-tile VPU maxima over 3 shifted reads, then
        a 0/1 selection matmul that picks the even-start windows AND lays the
        result out in the new (shorter) flat padded layout with zero halos."""
        R = BATCH * (L + 2 * PAD)
        lout = _pool_out(L)
        Rp = BATCH * (lout + 2 * PAD)
        a = xpad_ref[0:R - 2, 0:CH]
        b = xpad_ref[1:R - 1, 0:CH]
        c = xpad_ref[2:R, 0:CH]
        w3 = jnp.maximum(jnp.maximum(a, b), c)              # (R-2, CH)
        so = off[f'sel{blk}']
        sel = slab_ref[so:so + Rp, 0:R - 2]                 # precomputed 0/1
        p_pad = jnp.dot(sel, w3, preferred_element_type=jnp.float32)  # (Rp, CH)
        return p_pad, lout

    # ---- fused embedding lookup: one-hot (R0, V) @ (V, E) on the MXU ----------
    tok = tok_ref[...]                                      # (R0, 1) int32
    vocab_iota = lax.broadcasted_iota(jnp.int32, (R0, N_VOCAB), 1)
    onehot = (vocab_iota == tok).astype(jnp.float32)        # halo rows all-zero
    xpad_ref[0:R0, 0:EMBED] = jnp.dot(onehot, emb_tbl,
                                      preferred_element_type=jnp.float32)

    # ---- region conv: Conv2d(1, F, (K, E), padding=(1, 0)) --------------------
    L = SEQ
    x = conv_layer(L, EMBED, rw_taps, rb_v)

    # ---- two applications of the SAME PreActConv (ReLU -> Conv1d) -------------
    for _ in range(2):
        store_relu_body(L, x)
        x = conv_layer(L, F, cw_taps, cb_v)

    # ---- NUMS_BLOCK applications of the SAME ConvBlock ------------------------
    for blk in range(NUMS_BLOCK):
        store_for_pool(L, x)
        p_pad, lout = maxpool(L, blk)
        Rp = BATCH * (lout + 2 * PAD)
        # relu(pool) into the new flat layout; all halos come out zero for free
        xpad_ref[0:Rp, 0:CH] = jnp.maximum(p_pad, 0.0)
        f = None
        for t in range(2):                                  # multi_conv, shared w
            if t > 0:
                store_relu_body(lout, f)
            f = conv_layer(lout, F, bw_taps, bb_v)
        x = p_pad[1:Rp - 1, :] + f                          # residual (y layout)
        L = lout

    # ---- global max over sequence + dense head + single full store ------------
    stride = L + 2 * PAD
    g = jnp.concatenate(
        [jnp.max(x[bi * stride:bi * stride + L, :], axis=0, keepdims=True)
         for bi in range(BATCH)], axis=0)                   # (B, F)
    out_ref[...] = jnp.dot(g, dw_v, preferred_element_type=jnp.float32) + db_v


# ---------------- host-side packing --------------------------------------------
def pack_weight_slab(params):
    """Pack every model constant into one contiguous (SLAB_ROWS, 128) f32 slab.
    (Model-constant: in a real deployment this is built once, not per call.)"""
    emb_tbl, rw, rb, cw, cb, bw, bb, dw, db = params
    F = NUM_FILTERS
    pieces = {
        'rw': jnp.transpose(rw[:, 0], (1, 2, 0)).reshape(K * EMBED, F),
        'rb': rb[None, :],
        'cw': jnp.transpose(cw, (2, 1, 0)).reshape(K * F, F),
        'cb': cb[None, :],
        'bw': jnp.transpose(bw, (2, 1, 0)).reshape(K * F, F),
        'bb': bb[None, :],
        'dw': jnp.transpose(dw, (1, 0)),
        'db': db[None, :],
        'emb': emb_tbl,
    }
    # maxpool selection matrices: sel[bi*(lout+2)+1+j, bi*(Lin+2)+2*j] = 1
    for blk in range(NUMS_BLOCK):
        lin, lout = SEQ_LENS[blk], SEQ_LENS[blk + 1]
        rows = BATCH * (lout + 2 * PAD)
        cols = BATCH * (lin + 2 * PAD) - 2
        s = np.zeros((rows, cols), np.float32)
        for bi in range(BATCH):
            for j in range(lout):
                s[bi * (lout + 2 * PAD) + 1 + j,
                  bi * (lin + 2 * PAD) + POOL_STRIDE * j] = 1.0
        pieces[f'sel{blk}'] = jnp.asarray(s)

    slab = jnp.zeros((SLAB_ROWS, SLAB_W), jnp.float32)
    for name, arr in pieces.items():
        slab = lax.dynamic_update_slice(slab, arr.astype(jnp.float32),
                                        (SLAB_OFFS[name], 0))
    return slab


def make_tok_pad(tokens):
    """(B, L) int32 tokens -> (B*(L+2), 1) padded column, -1 at halo rows."""
    B, L = tokens.shape
    tp = jnp.full((B, L + 2 * PAD), -1, jnp.int32)
    tp = tp.at[:, PAD:PAD + L].set(tokens.astype(jnp.int32))
    return tp.reshape(B * (L + 2 * PAD), 1)


def dpcnn_forward(tokens, params):
    slab = pack_weight_slab(params)
    tok_pad = make_tok_pad(tokens)
    return pl.pallas_call(
        dpcnn_kernel,
        out_shape=jax.ShapeDtypeStruct((BATCH, NUM_CLASSES), jnp.float32),
        in_specs=[pl.BlockSpec(memory_space=pltpu.MemorySpace.VMEM),
                  pl.BlockSpec(memory_space=pltpu.MemorySpace.VMEM)],
        out_specs=pl.BlockSpec(memory_space=pltpu.MemorySpace.VMEM),
        scratch_shapes=[pltpu.VMEM((R0, CH), jnp.float32)],
    )(tok_pad, slab)


# ---------------- pure-JAX reference (PyTorch NCL semantics) -------------------
def dpcnn_reference(tokens, params):
    emb_tbl, rw, rb, cw, cb, bw, bb, dw, db = params

    def conv1d(x, w, b, pad):   # x: (B, C, L), w: (O, I, K)
        y = lax.conv_general_dilated(x, w, (1,), [(pad, pad)],
                                     dimension_numbers=('NCH', 'OIH', 'NCH'))
        return y + b[None, :, None]

    def maxpool(x, k, s, pad):
        return lax.reduce_window(x, -jnp.inf, lax.max,
                                 (1, 1, k), (1, 1, s),
                                 [(0, 0), (0, 0), (pad, pad)])

    emb = jnp.take(emb_tbl, tokens, axis=0)            # (B, L, E)
    x = jnp.transpose(emb, (0, 2, 1))                  # (B, E, L)
    rw1 = jnp.transpose(rw[:, 0], (0, 2, 1))           # (F, E, K)
    x = conv1d(x, rw1, rb, 1)                          # (B, F, L)
    for _ in range(2):
        x = conv1d(jax.nn.relu(x), cw, cb, PAD)
    for _ in range(NUMS_BLOCK):
        p = maxpool(x, K, POOL_STRIDE, PAD)
        f = p
        for _ in range(2):
            f = conv1d(jax.nn.relu(f), bw, bb, PAD)
        x = p + f
    g = jnp.max(x, axis=2)                             # (B, F)
    return g @ dw.T + db


# ---------------- main ---------------------------------------------------------
if __name__ == "__main__":
    key = jax.random.PRNGKey(0)
    ks = jax.random.split(key, 9)
    emb_tbl = jax.random.normal(ks[0], (N_VOCAB, EMBED), jnp.float32) * 0.5
    rw = jax.random.normal(ks[1], (NUM_FILTERS, 1, K, EMBED), jnp.float32) * 0.1
    rb = jax.random.normal(ks[2], (NUM_FILTERS,), jnp.float32) * 0.1
    cw = jax.random.normal(ks[3], (NUM_FILTERS, NUM_FILTERS, K), jnp.float32) * 0.1
    cb = jax.random.normal(ks[4], (NUM_FILTERS,), jnp.float32) * 0.1
    bw = jax.random.normal(ks[5], (NUM_FILTERS, NUM_FILTERS, K), jnp.float32) * 0.1
    bb = jax.random.normal(ks[6], (NUM_FILTERS,), jnp.float32) * 0.1
    dw = jax.random.normal(ks[7], (NUM_CLASSES, NUM_FILTERS), jnp.float32) * 0.1
    db = jax.random.normal(ks[8], (NUM_CLASSES,), jnp.float32) * 0.1
    params = (emb_tbl, rw, rb, cw, cb, bw, bb, dw, db)

    tokens = jax.random.randint(jax.random.PRNGKey(1), (BATCH, SEQ), 0, N_VOCAB)

    out = jax.block_until_ready(dpcnn_forward(tokens, params))
    ref = jax.block_until_ready(dpcnn_reference(tokens, params))
    assert out.shape == (BATCH, NUM_CLASSES)
    if not jnp.allclose(out, ref, atol=1e-4, rtol=1e-4):
        raise AssertionError(f"mismatch: pallas={out}, ref={ref}")
    print("KERNEL_OK")
</pallas_src>

<mosaic_0001>
module attributes {stable_mosaic.version = 11 : i64} {
  func.func @dpcnn_kernel(%arg0: memref<36x1xi32, #tpu.memory_space<vmem>>, %arg1: memref<448x128xf32, #tpu.memory_space<vmem>>, %arg2: memref<2x4xf32, #tpu.memory_space<vmem>>, %arg3: memref<36x32xf32, #tpu.memory_space<vmem>>) attributes {dimension_semantics = [], scalar_prefetch = 0 : i64, scratch_operands = 1 : i64, tpu.core_type = #tpu.core_type<tc>} {
    %cst = arith.constant 0.000000e+00 : f32
    %0 = vector.broadcast %cst : f32 to vector<2x32xf32>
    %cst_0 = arith.constant 0xFF800000 : f32
    %1 = vector.broadcast %cst_0 : f32 to vector<1x32xf32>
    %c0 = arith.constant 0 : index
    %c0_1 = arith.constant 0 : index
    %2 = vector.load %arg1[%c0, %c0_1] : memref<448x128xf32, #tpu.memory_space<vmem>>, vector<32x32xf32>
    %c32 = arith.constant 32 : index
    %c0_2 = arith.constant 0 : index
    %3 = vector.load %arg1[%c32, %c0_2] : memref<448x128xf32, #tpu.memory_space<vmem>>, vector<32x32xf32>
    %c64 = arith.constant 64 : index
    %c0_3 = arith.constant 0 : index
    %4 = vector.load %arg1[%c64, %c0_3] : memref<448x128xf32, #tpu.memory_space<vmem>>, vector<32x32xf32>
    %c96 = arith.constant 96 : index
    %c0_4 = arith.constant 0 : index
    %5 = vector.load %arg1[%c96, %c0_4] : memref<448x128xf32, #tpu.memory_space<vmem>>, vector<1x32xf32>
    %c104 = arith.constant 104 : index
    %c0_5 = arith.constant 0 : index
    %6 = vector.load %arg1[%c104, %c0_5] : memref<448x128xf32, #tpu.memory_space<vmem>>, vector<32x32xf32>
    %c136 = arith.constant 136 : index
    %c0_6 = arith.constant 0 : index
    %7 = vector.load %arg1[%c136, %c0_6] : memref<448x128xf32, #tpu.memory_space<vmem>>, vector<32x32xf32>
    %c168 = arith.constant 168 : index
    %c0_7 = arith.constant 0 : index
    %8 = vector.load %arg1[%c168, %c0_7] : memref<448x128xf32, #tpu.memory_space<vmem>>, vector<32x32xf32>
    %c200 = arith.constant 200 : index
    %c0_8 = arith.constant 0 : index
    %9 = vector.load %arg1[%c200, %c0_8] : memref<448x128xf32, #tpu.memory_space<vmem>>, vector<1x32xf32>
    %c208 = arith.constant 208 : index
    %c0_9 = arith.constant 0 : index
    %10 = vector.load %arg1[%c208, %c0_9] : memref<448x128xf32, #tpu.memory_space<vmem>>, vector<32x32xf32>
    %c240 = arith.constant 240 : index
    %c0_10 = arith.constant 0 : index
    %11 = vector.load %arg1[%c240, %c0_10] : memref<448x128xf32, #tpu.memory_space<vmem>>, vector<32x32xf32>
    %c272 = arith.constant 272 : index
    %c0_11 = arith.constant 0 : index
    %12 = vector.load %arg1[%c272, %c0_11] : memref<448x128xf32, #tpu.memory_space<vmem>>, vector<32x32xf32>
    %c304 = arith.constant 304 : index
    %c0_12 = arith.constant 0 : index
    %13 = vector.load %arg1[%c304, %c0_12] : memref<448x128xf32, #tpu.memory_space<vmem>>, vector<1x32xf32>
    %c312 = arith.constant 312 : index
    %c0_13 = arith.constant 0 : index
    %14 = vector.load %arg1[%c312, %c0_13] : memref<448x128xf32, #tpu.memory_space<vmem>>, vector<32x4xf32>
    %c344 = arith.constant 344 : index
    %c0_14 = arith.constant 0 : index
    %15 = vector.load %arg1[%c344, %c0_14] : memref<448x128xf32, #tpu.memory_space<vmem>>, vector<1x4xf32>
    %c392 = arith.constant 392 : index
    %c0_15 = arith.constant 0 : index
    %16 = vector.load %arg1[%c392, %c0_15] : memref<448x128xf32, #tpu.memory_space<vmem>>, vector<50x32xf32>
    %c0_16 = arith.constant 0 : index
    %c0_17 = arith.constant 0 : index
    %17 = vector.load %arg0[%c0_16, %c0_17] : memref<36x1xi32, #tpu.memory_space<vmem>>, vector<36x1xi32>
    %18 = tpu.iota {dimensions = array<i32: 1>} : vector<36x50xi32>
    %19 = vector.broadcast %17 : vector<36x1xi32> to vector<36x50xi32>
    %20 = arith.cmpi eq, %18, %19 : vector<36x50xi32>
    %21 = arith.extui %20 : vector<36x50xi1> to vector<36x50xi32>
    %22 = arith.sitofp %21 : vector<36x50xi32> to vector<36x50xf32>
    %cst_18 = arith.constant dense<0.000000e+00> : vector<36x32xf32>
    %23 = tpu.matmul %22, %16, %cst_18 {dimension_numbers = #tpu.dot_dimension_numbers<[1], [0], [0], [1], [0, 0, 1, 1], [], []>} : vector<36x50xf32>, vector<50x32xf32>, vector<36x32xf32> -> vector<36x32xf32>
    %c0_19 = arith.constant 0 : index
    %c0_20 = arith.constant 0 : index
    %24 = vector.load %arg3[%c0_19, %c0_20] : memref<36x32xf32, #tpu.memory_space<vmem>>, vector<36x32xf32>
    tpu.vector_store %arg3[%c0_19, %c0_20], %23 {strides = array<i32>} : memref<36x32xf32, #tpu.memory_space<vmem>>, vector<36x32xf32>,
    %c0_21 = arith.constant 0 : index
    %c0_22 = arith.constant 0 : index
    %25 = vector.load %arg3[%c0_21, %c0_22] : memref<36x32xf32, #tpu.memory_space<vmem>>, vector<34x32xf32>
    %cst_23 = arith.constant dense<0.000000e+00> : vector<34x32xf32>
    %26 = tpu.matmul %25, %2, %cst_23 {dimension_numbers = #tpu.dot_dimension_numbers<[1], [0], [0], [1], [0, 0, 1, 1], [], []>} : vector<34x32xf32>, vector<32x32xf32>, vector<34x32xf32> -> vector<34x32xf32>
    %27 = vector.broadcast %5 : vector<1x32xf32> to vector<34x32xf32>
    %28 = arith.addf %27, %26 : vector<34x32xf32>
    %c1 = arith.constant 1 : index
    %c0_24 = arith.constant 0 : index
    %29 = vector.load %arg3[%c1, %c0_24] : memref<36x32xf32, #tpu.memory_space<vmem>>, vector<34x32xf32>
    %cst_25 = arith.constant dense<0.000000e+00> : vector<34x32xf32>
    %30 = tpu.matmul %29, %3, %cst_25 {dimension_numbers = #tpu.dot_dimension_numbers<[1], [0], [0], [1], [0, 0, 1, 1], [], []>} : vector<34x32xf32>, vector<32x32xf32>, vector<34x32xf32> -> vector<34x32xf32>
    %31 = arith.addf %28, %30 : vector<34x32xf32>
    %c2 = arith.constant 2 : index
    %c0_26 = arith.constant 0 : index
    %32 = vector.load %arg3[%c2, %c0_26] : memref<36x32xf32, #tpu.memory_space<vmem>>, vector<34x32xf32>
    %cst_27 = arith.constant dense<0.000000e+00> : vector<34x32xf32>
    %33 = tpu.matmul %32, %4, %cst_27 {dimension_numbers = #tpu.dot_dimension_numbers<[1], [0], [0], [1], [0, 0, 1, 1], [], []>} : vector<34x32xf32>, vector<32x32xf32>, vector<34x32xf32> -> vector<34x32xf32>
    %34 = arith.addf %31, %33 : vector<34x32xf32>
    %cst_28 = arith.constant 0.000000e+00 : f32
    %35 = vector.broadcast %cst_28 : f32 to vector<34x32xf32>
    %36 = arith.maximumf %34, %35 : vector<34x32xf32>
    %c1_29 = arith.constant 1 : index
    %c0_30 = arith.constant 0 : index
    %37 = vector.load %arg3[%c1_29, %c0_30] : memref<36x32xf32, #tpu.memory_space<vmem>>, vector<34x32xf32>
    tpu.vector_store %arg3[%c1_29, %c0_30], %36 {strides = array<i32>} : memref<36x32xf32, #tpu.memory_space<vmem>>, vector<34x32xf32>,
    %c17 = arith.constant 17 : index
    %c0_31 = arith.constant 0 : index
    %38 = vector.load %arg3[%c17, %c0_31] : memref<36x32xf32, #tpu.memory_space<vmem>>, vector<2x32xf32>
    tpu.vector_store %arg3[%c17, %c0_31], %0 {strides = array<i32>} : memref<36x32xf32, #tpu.memory_space<vmem>>, vector<2x32xf32>,
    %c0_32 = arith.constant 0 : index
    %c0_33 = arith.constant 0 : index
    %39 = vector.load %arg3[%c0_32, %c0_33] : memref<36x32xf32, #tpu.memory_space<vmem>>, vector<34x32xf32>
    %cst_34 = arith.constant dense<0.000000e+00> : vector<34x32xf32>
    %40 = tpu.matmul %39, %6, %cst_34 {dimension_numbers = #tpu.dot_dimension_numbers<[1], [0], [0], [1], [0, 0, 1, 1], [], []>} : vector<34x32xf32>, vector<32x32xf32>, vector<34x32xf32> -> vector<34x32xf32>
    %41 = vector.broadcast %9 : vector<1x32xf32> to vector<34x32xf32>
    %42 = arith.addf %41, %40 : vector<34x32xf32>
    %c1_35 = arith.constant 1 : index
    %c0_36 = arith.constant 0 : index
    %43 = vector.load %arg3[%c1_35, %c0_36] : memref<36x32xf32, #tpu.memory_space<vmem>>, vector<34x32xf32>
    %cst_37 = arith.constant dense<0.000000e+00> : vector<34x32xf32>
    %44 = tpu.matmul %43, %7, %cst_37 {dimension_numbers = #tpu.dot_dimension_numbers<[1], [0], [0], [1], [0, 0, 1, 1], [], []>} : vector<34x32xf32>, vector<32x32xf32>, vector<34x32xf32> -> vector<34x32xf32>
    %45 = arith.addf %42, %44 : vector<34x32xf32>
    %c2_38 = arith.constant 2 : index
    %c0_39 = arith.constant 0 : index
    %46 = vector.load %arg3[%c2_38, %c0_39] : memref<36x32xf32, #tpu.memory_space<vmem>>, vector<34x32xf32>
    %cst_40 = arith.constant dense<0.000000e+00> : vector<34x32xf32>
    %47 = tpu.matmul %46, %8, %cst_40 {dimension_numbers = #tpu.dot_dimension_numbers<[1], [0], [0], [1], [0, 0, 1, 1], [], []>} : vector<34x32xf32>, vector<32x32xf32>, vector<34x32xf32> -> vector<34x32xf32>
    %48 = arith.addf %45, %47 : vector<34x32xf32>
    %cst_41 = arith.constant 0.000000e+00 : f32
    %49 = vector.broadcast %cst_41 : f32 to vector<34x32xf32>
    %50 = arith.maximumf %48, %49 : vector<34x32xf32>
    %c1_42 = arith.constant 1 : index
    %c0_43 = arith.constant 0 : index
    %51 = vector.load %arg3[%c1_42, %c0_43] : memref<36x32xf32, #tpu.memory_space<vmem>>, vector<34x32xf32>
    tpu.vector_store %arg3[%c1_42, %c0_43], %50 {strides = array<i32>} : memref<36x32xf32, #tpu.memory_space<vmem>>, vector<34x32xf32>,
    %c17_44 = arith.constant 17 : index
    %c0_45 = arith.constant 0 : index
    %52 = vector.load %arg3[%c17_44, %c0_45] : memref<36x32xf32, #tpu.memory_space<vmem>>, vector<2x32xf32>
    tpu.vector_store %arg3[%c17_44, %c0_45], %0 {strides = array<i32>} : memref<36x32xf32, #tpu.memory_space<vmem>>, vector<2x32xf32>,
    %c0_46 = arith.constant 0 : index
    %c0_47 = arith.constant 0 : index
    %53 = vector.load %arg3[%c0_46, %c0_47] : memref<36x32xf32, #tpu.memory_space<vmem>>, vector<34x32xf32>
    %cst_48 = arith.constant dense<0.000000e+00> : vector<34x32xf32>
    %54 = tpu.matmul %53, %6, %cst_48 {dimension_numbers = #tpu.dot_dimension_numbers<[1], [0], [0], [1], [0, 0, 1, 1], [], []>} : vector<34x32xf32>, vector<32x32xf32>, vector<34x32xf32> -> vector<34x32xf32>
    %55 = vector.broadcast %9 : vector<1x32xf32> to vector<34x32xf32>
    %56 = arith.addf %55, %54 : vector<34x32xf32>
    %c1_49 = arith.constant 1 : index
    %c0_50 = arith.constant 0 : index
    %57 = vector.load %arg3[%c1_49, %c0_50] : memref<36x32xf32, #tpu.memory_space<vmem>>, vector<34x32xf32>
    %cst_51 = arith.constant dense<0.000000e+00> : vector<34x32xf32>
    %58 = tpu.matmul %57, %7, %cst_51 {dimension_numbers = #tpu.dot_dimension_numbers<[1], [0], [0], [1], [0, 0, 1, 1], [], []>} : vector<34x32xf32>, vector<32x32xf32>, vector<34x32xf32> -> vector<34x32xf32>
    %59 = arith.addf %56, %58 : vector<34x32xf32>
    %c2_52 = arith.constant 2 : index
    %c0_53 = arith.constant 0 : index
    %60 = vector.load %arg3[%c2_52, %c0_53] : memref<36x32xf32, #tpu.memory_space<vmem>>, vector<34x32xf32>
    %cst_54 = arith.constant dense<0.000000e+00> : vector<34x32xf32>
    %61 = tpu.matmul %60, %8, %cst_54 {dimension_numbers = #tpu.dot_dimension_numbers<[1], [0], [0], [1], [0, 0, 1, 1], [], []>} : vector<34x32xf32>, vector<32x32xf32>, vector<34x32xf32> -> vector<34x32xf32>
    %62 = arith.addf %59, %61 : vector<34x32xf32>
    %c1_55 = arith.constant 1 : index
    %c0_56 = arith.constant 0 : index
    %63 = vector.load %arg3[%c1_55, %c0_56] : memref<36x32xf32, #tpu.memory_space<vmem>>, vector<34x32xf32>
    tpu.vector_store %arg3[%c1_55, %c0_56], %62 {strides = array<i32>} : memref<36x32xf32, #tpu.memory_space<vmem>>, vector<34x32xf32>,
    %c0_57 = arith.constant 0 : index
    %c0_58 = arith.constant 0 : index
    %64 = vector.load %arg3[%c0_57, %c0_58] : memref<36x32xf32, #tpu.memory_space<vmem>>, vector<1x32xf32>
    tpu.vector_store %arg3[%c0_57, %c0_58], %1 {strides = array<i32>} : memref<36x32xf32, #tpu.memory_space<vmem>>, vector<1x32xf32>,
    %c18 = arith.constant 18 : index
    %c0_59 = arith.constant 0 : index
    %65 = vector.load %arg3[%c18, %c0_59] : memref<36x32xf32, #tpu.memory_space<vmem>>, vector<1x32xf32>
    tpu.vector_store %arg3[%c18, %c0_59], %1 {strides = array<i32>} : memref<36x32xf32, #tpu.memory_space<vmem>>, vector<1x32xf32>,
    %c0_60 = arith.constant 0 : index
    %c0_61 = arith.constant 0 : index
    %66 = vector.load %arg3[%c0_60, %c0_61] : memref<36x32xf32, #tpu.memory_space<vmem>>, vector<34x32xf32>
    %c1_62 = arith.constant 1 : index
    %c0_63 = arith.constant 0 : index
    %67 = vector.load %arg3[%c1_62, %c0_63] : memref<36x32xf32, #tpu.memory_space<vmem>>, vector<34x32xf32>
    %c2_64 = arith.constant 2 : index
    %c0_65 = arith.constant 0 : index
    %68 = vector.load %arg3[%c2_64, %c0_65] : memref<36x32xf32, #tpu.memory_space<vmem>>, vector<34x32xf32>
    %69 = arith.maximumf %66, %67 : vector<34x32xf32>
    %70 = arith.maximumf %69, %68 : vector<34x32xf32>
    %c352 = arith.constant 352 : index
    %c0_66 = arith.constant 0 : index
    %71 = vector.load %arg1[%c352, %c0_66] : memref<448x128xf32, #tpu.memory_space<vmem>>, vector<20x34xf32>
    %cst_67 = arith.constant dense<0.000000e+00> : vector<20x32xf32>
    %72 = tpu.matmul %71, %70, %cst_67 {dimension_numbers = #tpu.dot_dimension_numbers<[1], [0], [0], [1], [0, 0, 1, 1], [], []>} : vector<20x34xf32>, vector<34x32xf32>, vector<20x32xf32> -> vector<20x32xf32>
    %cst_68 = arith.constant 0.000000e+00 : f32
    %73 = vector.broadcast %cst_68 : f32 to vector<20x32xf32>
    %74 = arith.maximumf %72, %73 : vector<20x32xf32>
    %c0_69 = arith.constant 0 : index
    %c0_70 = arith.constant 0 : index
    %75 = vector.load %arg3[%c0_69, %c0_70] : memref<36x32xf32, #tpu.memory_space<vmem>>, vector<20x32xf32>
    tpu.vector_store %arg3[%c0_69, %c0_70], %74 {strides = array<i32>} : memref<36x32xf32, #tpu.memory_space<vmem>>, vector<20x32xf32>,
    %c0_71 = arith.constant 0 : index
    %c0_72 = arith.constant 0 : index
    %76 = vector.load %arg3[%c0_71, %c0_72] : memref<36x32xf32, #tpu.memory_space<vmem>>, vector<18x32xf32>
    %cst_73 = arith.constant dense<0.000000e+00> : vector<18x32xf32>
    %77 = tpu.matmul %76, %10, %cst_73 {dimension_numbers = #tpu.dot_dimension_numbers<[1], [0], [0], [1], [0, 0, 1, 1], [], []>} : vector<18x32xf32>, vector<32x32xf32>, vector<18x32xf32> -> vector<18x32xf32>
    %78 = vector.broadcast %13 : vector<1x32xf32> to vector<18x32xf32>
    %79 = arith.addf %78, %77 : vector<18x32xf32>
    %c1_74 = arith.constant 1 : index
    %c0_75 = arith.constant 0 : index
    %80 = vector.load %arg3[%c1_74, %c0_75] : memref<36x32xf32, #tpu.memory_space<vmem>>, vector<18x32xf32>
    %cst_76 = arith.constant dense<0.000000e+00> : vector<18x32xf32>
    %81 = tpu.matmul %80, %11, %cst_76 {dimension_numbers = #tpu.dot_dimension_numbers<[1], [0], [0], [1], [0, 0, 1, 1], [], []>} : vector<18x32xf32>, vector<32x32xf32>, vector<18x32xf32> -> vector<18x32xf32>
    %82 = arith.addf %79, %81 : vector<18x32xf32>
    %c2_77 = arith.constant 2 : index
    %c0_78 = arith.constant 0 : index
    %83 = vector.load %arg3[%c2_77, %c0_78] : memref<36x32xf32, #tpu.memory_space<vmem>>, vector<18x32xf32>
    %cst_79 = arith.constant dense<0.000000e+00> : vector<18x32xf32>
    %84 = tpu.matmul %83, %12, %cst_79 {dimension_numbers = #tpu.dot_dimension_numbers<[1], [0], [0], [1], [0, 0, 1, 1], [], []>} : vector<18x32xf32>, vector<32x32xf32>, vector<18x32xf32> -> vector<18x32xf32>
    %85 = arith.addf %82, %84 : vector<18x32xf32>
    %cst_80 = arith.constant 0.000000e+00 : f32
    %86 = vector.broadcast %cst_80 : f32 to vector<18x32xf32>
    %87 = arith.maximumf %85, %86 : vector<18x32xf32>
    %c1_81 = arith.constant 1 : index
    %c0_82 = arith.constant 0 : index
    %88 = vector.load %arg3[%c1_81, %c0_82] : memref<36x32xf32, #tpu.memory_space<vmem>>, vector<18x32xf32>
    tpu.vector_store %arg3[%c1_81, %c0_82], %87 {strides = array<i32>} : memref<36x32xf32, #tpu.memory_space<vmem>>, vector<18x32xf32>,
    %c9 = arith.constant 9 : index
    %c0_83 = arith.constant 0 : index
    %89 = vector.load %arg3[%c9, %c0_83] : memref<36x32xf32, #tpu.memory_space<vmem>>, vector<2x32xf32>
    tpu.vector_store %arg3[%c9, %c0_83], %0 {strides = array<i32>} : memref<36x32xf32, #tpu.memory_space<vmem>>, vector<2x32xf32>,
    %c0_84 = arith.constant 0 : index
    %c0_85 = arith.constant 0 : index
    %90 = vector.load %arg3[%c0_84, %c0_85] : memref<36x32xf32, #tpu.memory_space<vmem>>, vector<18x32xf32>
    %cst_86 = arith.constant dense<0.000000e+00> : vector<18x32xf32>
    %91 = tpu.matmul %90, %10, %cst_86 {dimension_numbers = #tpu.dot_dimension_numbers<[1], [0], [0], [1], [0, 0, 1, 1], [], []>} : vector<18x32xf32>, vector<32x32xf32>, vector<18x32xf32> -> vector<18x32xf32>
    %92 = vector.broadcast %13 : vector<1x32xf32> to vector<18x32xf32>
    %93 = arith.addf %92, %91 : vector<18x32xf32>
    %c1_87 = arith.constant 1 : index
    %c0_88 = arith.constant 0 : index
    %94 = vector.load %arg3[%c1_87, %c0_88] : memref<36x32xf32, #tpu.memory_space<vmem>>, vector<18x32xf32>
    %cst_89 = arith.constant dense<0.000000e+00> : vector<18x32xf32>
    %95 = tpu.matmul %94, %11, %cst_89 {dimension_numbers = #tpu.dot_dimension_numbers<[1], [0], [0], [1], [0, 0, 1, 1], [], []>} : vector<18x32xf32>, vector<32x32xf32>, vector<18x32xf32> -> vector<18x32xf32>
    %96 = arith.addf %93, %95 : vector<18x32xf32>
    %c2_90 = arith.constant 2 : index
    %c0_91 = arith.constant 0 : index
    %97 = vector.load %arg3[%c2_90, %c0_91] : memref<36x32xf32, #tpu.memory_space<vmem>>, vector<18x32xf32>
    %cst_92 = arith.constant dense<0.000000e+00> : vector<18x32xf32>
    %98 = tpu.matmul %97, %12, %cst_92 {dimension_numbers = #tpu.dot_dimension_numbers<[1], [0], [0], [1], [0, 0, 1, 1], [], []>} : vector<18x32xf32>, vector<32x32xf32>, vector<18x32xf32> -> vector<18x32xf32>
    %99 = arith.addf %96, %98 : vector<18x32xf32>
    %100 = vector.extract_strided_slice %72 {offsets = [1, 0], sizes = [18, 32], strides = [1, 1]} : vector<20x32xf32> to vector<18x32xf32>
    %101 = arith.addf %100, %99 : vector<18x32xf32>
    %c1_93 = arith.constant 1 : index
    %c0_94 = arith.constant 0 : index
    %102 = vector.load %arg3[%c1_93, %c0_94] : memref<36x32xf32, #tpu.memory_space<vmem>>, vector<18x32xf32>
    tpu.vector_store %arg3[%c1_93, %c0_94], %101 {strides = array<i32>} : memref<36x32xf32, #tpu.memory_space<vmem>>, vector<18x32xf32>,
    %c0_95 = arith.constant 0 : index
    %c0_96 = arith.constant 0 : index
    %103 = vector.load %arg3[%c0_95, %c0_96] : memref<36x32xf32, #tpu.memory_space<vmem>>, vector<1x32xf32>
    tpu.vector_store %arg3[%c0_95, %c0_96], %1 {strides = array<i32>} : memref<36x32xf32, #tpu.memory_space<vmem>>, vector<1x32xf32>,
    %c10 = arith.constant 10 : index
    %c0_97 = arith.constant 0 : index
    %104 = vector.load %arg3[%c10, %c0_97] : memref<36x32xf32, #tpu.memory_space<vmem>>, vector<1x32xf32>
    tpu.vector_store %arg3[%c10, %c0_97], %1 {strides = array<i32>} : memref<36x32xf32, #tpu.memory_space<vmem>>, vector<1x32xf32>,
    %c0_98 = arith.constant 0 : index
    %c0_99 = arith.constant 0 : index
    %105 = vector.load %arg3[%c0_98, %c0_99] : memref<36x32xf32, #tpu.memory_space<vmem>>, vector<18x32xf32>
    %c1_100 = arith.constant 1 : index
    %c0_101 = arith.constant 0 : index
    %106 = vector.load %arg3[%c1_100, %c0_101] : memref<36x32xf32, #tpu.memory_space<vmem>>, vector<18x32xf32>
    %c2_102 = arith.constant 2 : index
    %c0_103 = arith.constant 0 : index
    %107 = vector.load %arg3[%c2_102, %c0_103] : memref<36x32xf32, #tpu.memory_space<vmem>>, vector<18x32xf32>
    %108 = arith.maximumf %105, %106 : vector<18x32xf32>
    %109 = arith.maximumf %108, %107 : vector<18x32xf32>
    %c376 = arith.constant 376 : index
    %c0_104 = arith.constant 0 : index
    %110 = vector.load %arg1[%c376, %c0_104] : memref<448x128xf32, #tpu.memory_space<vmem>>, vector<12x18xf32>
    %cst_105 = arith.constant dense<0.000000e+00> : vector<12x32xf32>
    %111 = tpu.matmul %110, %109, %cst_105 {dimension_numbers = #tpu.dot_dimension_numbers<[1], [0], [0], [1], [0, 0, 1, 1], [], []>} : vector<12x18xf32>, vector<18x32xf32>, vector<12x32xf32> -> vector<12x32xf32>
    %cst_106 = arith.constant 0.000000e+00 : f32
    %112 = vector.broadcast %cst_106 : f32 to vector<12x32xf32>
    %113 = arith.maximumf %111, %112 : vector<12x32xf32>
    %c0_107 = arith.constant 0 : index
    %c0_108 = arith.constant 0 : index
    %114 = vector.load %arg3[%c0_107, %c0_108] : memref<36x32xf32, #tpu.memory_space<vmem>>, vector<12x32xf32>
    tpu.vector_store %arg3[%c0_107, %c0_108], %113 {strides = array<i32>} : memref<36x32xf32, #tpu.memory_space<vmem>>, vector<12x32xf32>,
    %c0_109 = arith.constant 0 : index
    %c0_110 = arith.constant 0 : index
    %115 = vector.load %arg3[%c0_109, %c0_110] : memref<36x32xf32, #tpu.memory_space<vmem>>, vector<10x32xf32>
    %cst_111 = arith.constant dense<0.000000e+00> : vector<10x32xf32>
    %116 = tpu.matmul %115, %10, %cst_111 {dimension_numbers = #tpu.dot_dimension_numbers<[1], [0], [0], [1], [0, 0, 1, 1], [], []>} : vector<10x32xf32>, vector<32x32xf32>, vector<10x32xf32> -> vector<10x32xf32>
    %117 = vector.broadcast %13 : vector<1x32xf32> to vector<10x32xf32>
    %118 = arith.addf %117, %116 : vector<10x32xf32>
    %c1_112 = arith.constant 1 : index
    %c0_113 = arith.constant 0 : index
    %119 = vector.load %arg3[%c1_112, %c0_113] : memref<36x32xf32, #tpu.memory_space<vmem>>, vector<10x32xf32>
    %cst_114 = arith.constant dense<0.000000e+00> : vector<10x32xf32>
    %120 = tpu.matmul %119, %11, %cst_114 {dimension_numbers = #tpu.dot_dimension_numbers<[1], [0], [0], [1], [0, 0, 1, 1], [], []>} : vector<10x32xf32>, vector<32x32xf32>, vector<10x32xf32> -> vector<10x32xf32>
    %121 = arith.addf %118, %120 : vector<10x32xf32>
    %c2_115 = arith.constant 2 : index
    %c0_116 = arith.constant 0 : index
    %122 = vector.load %arg3[%c2_115, %c0_116] : memref<36x32xf32, #tpu.memory_space<vmem>>, vector<10x32xf32>
    %cst_117 = arith.constant dense<0.000000e+00> : vector<10x32xf32>
    %123 = tpu.matmul %122, %12, %cst_117 {dimension_numbers = #tpu.dot_dimension_numbers<[1], [0], [0], [1], [0, 0, 1, 1], [], []>} : vector<10x32xf32>, vector<32x32xf32>, vector<10x32xf32> -> vector<10x32xf32>
    %124 = arith.addf %121, %123 : vector<10x32xf32>
    %cst_118 = arith.constant 0.000000e+00 : f32
    %125 = vector.broadcast %cst_118 : f32 to vector<10x32xf32>
    %126 = arith.maximumf %124, %125 : vector<10x32xf32>
    %c1_119 = arith.constant 1 : index
    %c0_120 = arith.constant 0 : index
    %127 = vector.load %arg3[%c1_119, %c0_120] : memref<36x32xf32, #tpu.memory_space<vmem>>, vector<10x32xf32>
    tpu.vector_store %arg3[%c1_119, %c0_120], %126 {strides = array<i32>} : memref<36x32xf32, #tpu.memory_space<vmem>>, vector<10x32xf32>,
    %c5 = arith.constant 5 : index
    %c0_121 = arith.constant 0 : index
    %128 = vector.load %arg3[%c5, %c0_121] : memref<36x32xf32, #tpu.memory_space<vmem>>, vector<2x32xf32>
    tpu.vector_store %arg3[%c5, %c0_121], %0 {strides = array<i32>} : memref<36x32xf32, #tpu.memory_space<vmem>>, vector<2x32xf32>,
    %c0_122 = arith.constant 0 : index
    %c0_123 = arith.constant 0 : index
    %129 = vector.load %arg3[%c0_122, %c0_123] : memref<36x32xf32, #tpu.memory_space<vmem>>, vector<10x32xf32>
    %cst_124 = arith.constant dense<0.000000e+00> : vector<10x32xf32>
    %130 = tpu.matmul %129, %10, %cst_124 {dimension_numbers = #tpu.dot_dimension_numbers<[1], [0], [0], [1], [0, 0, 1, 1], [], []>} : vector<10x32xf32>, vector<32x32xf32>, vector<10x32xf32> -> vector<10x32xf32>
    %131 = vector.broadcast %13 : vector<1x32xf32> to vector<10x32xf32>
    %132 = arith.addf %131, %130 : vector<10x32xf32>
    %c1_125 = arith.constant 1 : index
    %c0_126 = arith.constant 0 : index
    %133 = vector.load %arg3[%c1_125, %c0_126] : memref<36x32xf32, #tpu.memory_space<vmem>>, vector<10x32xf32>
    %cst_127 = arith.constant dense<0.000000e+00> : vector<10x32xf32>
    %134 = tpu.matmul %133, %11, %cst_127 {dimension_numbers = #tpu.dot_dimension_numbers<[1], [0], [0], [1], [0, 0, 1, 1], [], []>} : vector<10x32xf32>, vector<32x32xf32>, vector<10x32xf32> -> vector<10x32xf32>
    %135 = arith.addf %132, %134 : vector<10x32xf32>
    %c2_128 = arith.constant 2 : index
    %c0_129 = arith.constant 0 : index
    %136 = vector.load %arg3[%c2_128, %c0_129] : memref<36x32xf32, #tpu.memory_space<vmem>>, vector<10x32xf32>
    %cst_130 = arith.constant dense<0.000000e+00> : vector<10x32xf32>
    %137 = tpu.matmul %136, %12, %cst_130 {dimension_numbers = #tpu.dot_dimension_numbers<[1], [0], [0], [1], [0, 0, 1, 1], [], []>} : vector<10x32xf32>, vector<32x32xf32>, vector<10x32xf32> -> vector<10x32xf32>
    %138 = arith.addf %135, %137 : vector<10x32xf32>
    %139 = vector.extract_strided_slice %111 {offsets = [1, 0], sizes = [10, 32], strides = [1, 1]} : vector<12x32xf32> to vector<10x32xf32>
    %140 = arith.addf %139, %138 : vector<10x32xf32>
    %141 = vector.extract_strided_slice %140 {offsets = [0, 0], sizes = [4, 32], strides = [1, 1]} : vector<10x32xf32> to vector<4x32xf32>
    %cst_131 = arith.constant dense<0xFF800000> : vector<32xf32>
    %142 = vector.multi_reduction <maximumf>, %141, %cst_131 [0] : vector<4x32xf32> to vector<32xf32>
    %143 = vector.shape_cast %142 : vector<32xf32> to vector<1x32xf32>
    %144 = vector.extract_strided_slice %140 {offsets = [6, 0], sizes = [4, 32], strides = [1, 1]} : vector<10x32xf32> to vector<4x32xf32>
    %cst_132 = arith.constant dense<0xFF800000> : vector<32xf32>
    %145 = vector.multi_reduction <maximumf>, %144, %cst_132 [0] : vector<4x32xf32> to vector<32xf32>
    %146 = vector.shape_cast %145 : vector<32xf32> to vector<1x32xf32>
    %147 = tpu.concatenate %143, %146 in 0 : vector<1x32xf32>, vector<1x32xf32> -> vector<2x32xf32>
    %cst_133 = arith.constant dense<0.000000e+00> : vector<2x4xf32>
    %148 = tpu.matmul %147, %14, %cst_133 {dimension_numbers = #tpu.dot_dimension_numbers<[1], [0], [0], [1], [0, 0, 1, 1], [], []>} : vector<2x32xf32>, vector<32x4xf32>, vector<2x4xf32> -> vector<2x4xf32>
    %149 = vector.broadcast %15 : vector<1x4xf32> to vector<2x4xf32>
    %150 = arith.addf %148, %149 : vector<2x4xf32>
    %c0_134 = arith.constant 0 : index
    %c0_135 = arith.constant 0 : index
    %151 = vector.load %arg2[%c0_134, %c0_135] : memref<2x4xf32, #tpu.memory_space<vmem>>, vector<2x4xf32>
    tpu.vector_store %arg2[%c0_134, %c0_135], %150 {strides = array<i32>} : memref<2x4xf32, #tpu.memory_space<vmem>>, vector<2x4xf32>,
    return
  }
}

</mosaic_0001>

<bundles_post_ra>
// kernel: tpu_custom_call.1
= control target key start
LH: loop header
LB: loop body
LE: loop exit
PB: predicated region body
PF: predicated region fallthrough
CT: control target
= control target key end

     0   :  { %7 = vsyncpa [#allocation4], 0  ;;  %s4159_s0 = inlined_call_operand.vmem [shape: s32[36,1], index: 0, kind: input, shape index: {}]   ;;  %s4160_s1 = inlined_call_operand.hbm [shape: f32[448,128], index: 1, kind: input, shape index: {}]   ;;  %s4161_s2 = inlined_call_operand.hbm [shape: f32[2,4], index: 2, kind: output, shape index: {}]  }
   0x1   :  { %8 = vsyncpa [#allocation5], 0  ;;  %s3562_s9 = smov [#allocation3]  }
   0x2   :  { %s16_s10 = sshll.u32 %s3562_s9, 4  ;;  %s17_s10 = int_to_ptr.vmem [resolvable:$true] %s16_s10 }
   0x3   :  { %s3526_s11 = scalar_lea.vmem %s17_s10, 7168  ;;  %p3531_p1 = scmp.lt.s32.totalorder %s17_s10, %s17_s10 }
   0x4   :  { %p3527_p0 = scmp.ne.s32.totalorder %s17_s10, %s3526_s11  ;;  %p3532_p2 = scmp.lt.s32.totalorder %s3526_s11, %s3526_s11 }
   0x6   :  { %p3533_p3 = por %p3532_p2, %p3531_p1 }
   0x8   :  { %p3534_p4 = pnand %p3533_p3, %p3527_p0 }
   0xa   :  { %3537 = shalt.err (!%p3534_p4)
}
   0xb   :  { %s3563_s12 = smov 128   ;;  %s3564_s13 = smov 8  }
   0xc   :  { %22 = dma.hbm_to_vmem [thread:$0]  %s4160_s1, 7168, %s17_s10, [#allocation4], %s3563_s12, %s3563_s12, %s3564_s13  }
   0xd   :  { %3558 = dma.done.wait [#allocation4], 7168  }
   0xe   :  { %3559 = vsyncadd [#allocation4], 4294960128  ;;  %v3565_v0 = vmov 0   ;;  %v3566_v1 = vmov 0.0   ;;  %vm3567_vm0 = vmmov 0   ;;  %vm130_vm1 = vcmask 1041408  }
   0xf   :  { %3516 = vset.pattern.permute.xlu0 %v3565_v0  ;;  %3517 = vset.pattern.permute.xlu1 %v3565_v0  ;;  %v77_v2 = vld [vmem:[%s4159_s0] sm:$0xff]  ;;  %v79_v3 = vld [vmem:[%s4159_s0 + $0x10] sm:$0xff]  ;;  %v78_v5 = vld [vmem:[%s4159_s0 + $0x8] sm:$0xff]  ;;  %v82_v14 = vlaneseq  ;;  %vm114_vm2 = vcmask 408576   ;;  %vm224_vm8 = vcmask 261120   ;;  %vm229_vm9 = vcmask 257024  }
  0x10   :  { %3065 = vmatprep.subr.mxu0 %v3566_v1  ;;  %3094 = vmatprep.subr.mxu1 %v3566_v1  ;;  %v76_v4 = vld [vmem:[#allocation3 + $0x1b8] sm:$0x3]  ;;  %v80_v6 = vld [vmem:[%s4159_s0 + $0x18] sm:$0xff]  ;;  %v74_v8 = vld [vmem:[#allocation3 + $0x1a8] sm:$0xff]  ;;  %vm589_vm10 = vcmask 254976   ;;  %vm1302_vm11 = vcmask 253952  }
  0x11   :  { %3079 = vmatprep.mubr.msk.f32.mxu0 %vm3567_vm0, %v3566_v1  ;;  %3102 = vmatprep.mubr.msk.f32.mxu1 %vm3567_vm0, %v3566_v1  ;;  %v75_v7 = vld [vmem:[#allocation3 + $0x1b0] sm:$0xff]  ;;  %v81_v9 = vld [vmem:[%s4159_s0 + $0x20] sm:$0xf]  ;;  %v73_v10 = vld [vmem:[#allocation3 + $0x1a0] sm:$0xff]  ;;  %v83_v15 = vand.u32 127, %v82_v14  ;;  %vm1333_vm12 = vcmask 277504  }
  0x12   :  { %85 = vperm.xlu0 %3516, %v77_v2   ;;  %91 = vperm.xlu1 %3517, %v79_v3   ;;  %v72_v11 = vld [vmem:[#allocation3 + $0x198] sm:$0xff]  ;;  %v71_v12 = vld [vmem:[#allocation3 + $0x190] sm:$0xff]  ;;  %v70_v13 = vld [vmem:[#allocation3 + $0x188] sm:$0xff]  ;;  %vm2052_vm13 = vcmask 146432   ;;  %vm2028_vm14 = vcmask 261121   ;;  %vm2016_vm15 = vcmask 1040384  }
  0x13   :  { %3066 = vmatpush3.msk.msra.mxu0 %vm130_vm1, %v76_v4  ;;  %v29_v26 = vld [vmem:[#allocation3 + $0x18] sm:$0xff]  ;;  %v28_v27 = vld [vmem:[#allocation3 + $0x10] sm:$0xff]  ;;  %v27_v28 = vld [vmem:[#allocation3 + $0x8] sm:$0xff]  ;;  %s3569_s0 = smov [#allocation6]  }
  0x14   :  { %3067 = vmatprep.subr.mxu0 %v3566_v1  ;;  %3095 = vmatpush3.msra.mxu1 %v29_v26  ;;  %v37_v29 = vld [vmem:[#allocation3 + $0x58] sm:$0xff]  ;;  %v26_v30 = vld [vmem:[#allocation3] sm:$0xff]  ;;  %v36_v31 = vld [vmem:[#allocation3 + $0x50] sm:$0xff]  ;;  %s2769_s25 = sshll.u32 %s3569_s0, 4  ;;  %s2770_s25 = int_to_ptr.vmem [resolvable:$true] %s2769_s25 }
  0x15   :  { %3068 = vmatpush3.msra.mxu0 %v75_v7  ;;  %3096 = vmatprep.subr.mxu1 %v3566_v1  ;;  %v35_v32 = vld [vmem:[#allocation3 + $0x48] sm:$0xff]  ;;  %v34_v33 = vld [vmem:[#allocation3 + $0x40] sm:$0xff]  ;;  %v33_v38 = vld [vmem:[#allocation3 + $0x38] sm:$0xff]  ;;  %s3538_s26 = scalar_lea.vmem %s2770_s25, 32  ;;  %p3543_p6 = scmp.lt.s32.totalorder %s2770_s25, %s2770_s25 }
  0x16   :  { %88 = vperm.xlu0 %3516, %v78_v5   ;;  %94 = vperm.xlu1 %3517, %v80_v6   ;;  %v32_v41 = vld [vmem:[#allocation3 + $0x30] sm:$0xff]  ;;  %v31_v46 = vld [vmem:[#allocation3 + $0x28] sm:$0xff]  ;;  %v30_v51 = vld [vmem:[#allocation3 + $0x20] sm:$0xff]  ;;  %p3539_p5 = scmp.ne.s32.totalorder %s2770_s25, %s3538_s26  ;;  %p3544_p7 = scmp.lt.s32.totalorder %s3538_s26, %s3538_s26 }
  0x17   :  { %3069 = vmatprep.subr.mxu0 %v3566_v1  ;;  %3097 = vmatpush3.msra.mxu1 %v28_v27  ;;  %v3699_v63 = vld [vmem:[#allocation3 + $0x80] sm:$0xff]  ;;  %v3707_v2 = vld [vmem:[#allocation3 + $0x78] sm:$0xff]  ;;  %v3715_v4 = vld [vmem:[#allocation3 + $0x70] sm:$0xff] }
  0x18   :  { %3070 = vmatpush3.msra.mxu0 %v74_v8  ;;  %3098 = vmatprep.subr.mxu1 %v3566_v1  ;;  %v3701_v0 = vld [vmem:[#allocation3 + $0xa0] sm:$0xff]  ;;  %v3709_v3 = vld [vmem:[#allocation3 + $0x98] sm:$0xff]  ;;  %v3717_v5 = vld [vmem:[#allocation3 + $0x90] sm:$0xff]  ;;  %p3545_p8 = por %p3544_p7, %p3543_p6 }
  0x19   :  { %3071 = vmatprep.subr.mxu0 %v3566_v1  ;;  %3099 = vmatpush3.msra.mxu1 %v27_v28  ;;  %v3723_v6 = vld [vmem:[#allocation3 + $0x68] sm:$0xff] }
  0x1a   :  { %97 = vperm.xlu0 %3516, %v81_v9   ;;  %3072 = vmatpush3.msra.mxu0 %v73_v10  ;;  %v3725_v7 = vld [vmem:[#allocation3 + $0x88] sm:$0xff]  ;;  %p3546_p9 = pnand %p3545_p8, %p3539_p5 }
  0x1b   :  { %3073 = vmatprep.subr.mxu0 %v3566_v1  ;;  %3100 = vmatprep.subr.mxu1 %v3566_v1 }
  0x1c   :  { %3074 = vmatpush3.msra.mxu0 %v72_v11  ;;  %3101 = vmatpush3.msra.mxu1 %v26_v30 }
  0x1d   :  { %3075 = vmatprep.subr.mxu0 %v3566_v1  ;;  %3117 = vmatprep.subr.mxu1 %v3566_v1 }
  0x1e   :  { %3076 = vmatpush3.msra.mxu0 %v71_v12 }
  0x1f   :  { %3077 = vmatprep.subr.mxu0 %v3566_v1 }
  0x20   :  { %3078 = vmatpush3.msra.mxu0 %v70_v13 }
  0x21   :  { %3140 = vmatprep.subr.mxu0 %v3566_v1 }
  0x8d   :  { %v86_v16 = vpop.permute.xlu0 %85  ;;  %v92_v18 = vpop.permute.xlu1 %91 }
  0x8e   :  { %vm99_vm3 = vcmp.eq.s32.totalorder %v83_v15, %v86_v16  ;;  %vm101_vm4 = vcmp.eq.s32.totalorder %v83_v15, %v92_v18 }
  0x8f   :  { %v2778_v17 = vsel %vm99_vm3, 1.0, %v3566_v1  ;;  %v2780_v21 = vsel %vm101_vm4, 1.0, %v3566_v1  ;;  %vm2761_vm3 = vcmask 25600  }
  0x90   :  { %3080 = vmatmul.mubr.msk.f32.vlgmr.msra.gmra.mxu0 %vm114_vm2, %v2778_v17 }
  0x91   :  { %v89_v19 = vpop.permute.xlu0 %88  ;;  %3082 = vmatprep.mubr.msk.f32.mxu0 %vm3567_vm0, %v3566_v1  ;;  %v95_v22 = vpop.permute.xlu1 %94  ;;  %3141 = vmatpush3.msra.mxu0 %v37_v29 }
  0x92   :  { %vm100_vm5 = vcmp.eq.s32.totalorder %v83_v15, %v89_v19  ;;  %vm102_vm6 = vcmp.eq.s32.totalorder %v83_v15, %v95_v22  ;;  %3142 = vmatprep.subr.mxu0 %v3566_v1  ;;  %v2794_v22 = vld [vmem:[#allocation3 + $0x60] ss:$0 sm:$0xff] }
  0x93   :  { %v2779_v20 = vsel %vm100_vm5, 1.0, %v3566_v1  ;;  %v2781_v24 = vsel %vm102_vm6, 1.0, %v3566_v1  ;;  %3143 = vmatpush3.msra.mxu0 %v36_v31 }
  0x94   :  { %3083 = vmatmul.mubr.msk.f32.gmra.mxu0 %vm114_vm2, %v2779_v20  ;;  %3144 = vmatprep.subr.mxu0 %v3566_v1 }
  0x95   :  { %3085 = vmatprep.mubr.msk.f32.mxu0 %vm3567_vm0, %v3566_v1  ;;  %v98_v23 = vpop.permute.xlu0 %97  ;;  %3145 = vmatpush3.msra.mxu0 %v35_v32 }
  0x96   :  { %vm103_vm7 = vcmp.eq.s32.totalorder %v83_v15, %v98_v23  ;;  %3146 = vmatprep.subr.mxu0 %v3566_v1 }
  0x97   :  { %v2782_v25 = vsel %vm103_vm7, 1.0, %v3566_v1  ;;  %3147 = vmatpush3.msra.mxu0 %v34_v33 }
  0x98   :  { %3086 = vmatmul.mubr.msk.f32.gmra.mxu0 %vm114_vm2, %v2780_v21  ;;  %3186 = vmatprep.subr.mxu0 %v3566_v1 }
  0x99   :  { %3088 = vmatprep.mubr.msk.f32.mxu0 %vm3567_vm0, %v3566_v1 }
  0x9c   :  { %3089 = vmatmul.mubr.msk.f32.gmra.mxu0 %vm114_vm2, %v2781_v24 }
  0x9d   :  { %3091 = vmatprep.mubr.msk.f32.mxu0 %vm3567_vm0, %v3566_v1 }
  0xa0   :  { %3092 = vmatmul.mubr.msk.f32.gmra.mxu0 %vm114_vm2, %v2782_v25  ;;  %vm2031_vm2 = vcmask 256000  }
  0xa1   :  { %3148 = vmatprep.mubr.msk.f32.mxu0 %vm3567_vm0, %v3566_v1 }
 0x150   :  { %v200_v34 = vpop.f32.mrf.mxu0 }
 0x151   :  { %225 = vst.msk [vmem:[#allocation2] sm:$0xff] %vm224_vm8, %v200_v34 }
 0x152   :  { %v3081_v35 = vpop.f32.mrf.mxu0 }
 0x154   :  { %v205_v36 = vpop.f32.mrf.mxu0 }
 0x155   :  { %226 = vst.msk [vmem:[#allocation2 + $0x8] sm:$0xff] %vm224_vm8, %v205_v36 }
 0x156   :  { %v3084_v37 = vpop.f32.mrf.mxu0 }
 0x158   :  { %v210_v39 = vpop.f32.mrf.mxu0  ;;  %v231_v40 = vld [vmem:[#allocation2] sm:$0xff] }
 0x159   :  { %227 = vst.msk [vmem:[#allocation2 + $0x10] sm:$0xff] %vm224_vm8, %v210_v39  ;;  %3103 = vmatmul.mubr.msk.f32.vlgmr.msra.gmra.mxu1 %vm224_vm8, %v231_v40 }
 0x15a   :  { %v3087_v42 = vpop.f32.mrf.mxu0  ;;  %3105 = vmatprep.mubr.msk.f32.mxu1 %vm3567_vm0, %v3566_v1  ;;  %3118 = vmatpush3.msra.mxu1 %v33_v38 }
 0x15b   :  { %3119 = vmatprep.subr.mxu1 %v3566_v1 }
 0x15c   :  { %v465_v43 = vld [vmem:[#allocation2 + $0x2] sm:$0xff]  ;;  %v215_v44 = vpop.f32.mrf.mxu0  ;;  %3120 = vmatpush3.msra.mxu1 %v32_v41 }
 0x15d   :  { %v232_v45 = vld [vmem:[#allocation2 + $0x8] sm:$0xff]  ;;  %228 = vst.msk [vmem:[#allocation2 + $0x18] sm:$0xff] %vm224_vm8, %v215_v44  ;;  %3149 = vmatmul.mubr.msk.f32.vlgmr.msra.gmra.mxu0 %vm224_vm8, %v465_v43  ;;  %3121 = vmatprep.subr.mxu1 %v3566_v1 }
 0x15e   :  { %3106 = vmatmul.mubr.msk.f32.gmra.mxu1 %vm224_vm8, %v232_v45  ;;  %v3090_v47 = vpop.f32.mrf.mxu0  ;;  %3151 = vmatprep.mubr.msk.f32.mxu0 %vm3567_vm0, %v3566_v1  ;;  %v350_v57 = vld [vmem:[#allocation2 + $0x1] sm:$0xff] }
 0x15f   :  { %3108 = vmatprep.mubr.msk.f32.mxu1 %vm3567_vm0, %v3566_v1  ;;  %3122 = vmatpush3.msra.mxu1 %v31_v46 }
 0x160   :  { %v233_v48 = vld [vmem:[#allocation2 + $0x10] sm:$0xff]  ;;  %v220_v50 = vpop.f32.mrf.mxu0  ;;  %3123 = vmatprep.subr.mxu1 %v3566_v1  ;;  %3187 = vmatpush3.msra.mxu0 %v3701_v0 }
 0x161   :  { %v466_v49 = vld [vmem:[#allocation2 + $0xa] sm:$0xff]  ;;  %230 = vst.msk [vmem:[#allocation2 + $0x20] sm:$0xf] %vm229_vm9, %v220_v50  ;;  %3124 = vmatpush3.msra.mxu1 %v30_v51  ;;  %3188 = vmatprep.subr.mxu0 %v3566_v1 }
 0x162   :  { %3109 = vmatmul.mubr.msk.f32.gmra.mxu1 %vm224_vm8, %v233_v48  ;;  %3152 = vmatmul.mubr.msk.f32.gmra.mxu0 %vm224_vm8, %v466_v49  ;;  %v3093_v52 = vpop.f32.mrf.mxu0  ;;  %v351_v59 = vld [vmem:[#allocation2 + $0x9] sm:$0xff] }
 0x163   :  { %3111 = vmatprep.mubr.msk.f32.mxu1 %vm3567_vm0, %v3566_v1  ;;  %3154 = vmatprep.mubr.msk.f32.mxu0 %vm3567_vm0, %v3566_v1 }
 0x164   :  { %v467_v53 = vld [vmem:[#allocation2 + $0x12] sm:$0xff]  ;;  %3163 = vmatprep.subr.mxu1 %v3566_v1  ;;  %3189 = vmatpush3.msra.mxu0 %v3709_v3 }
 0x165   :  { %v234_v54 = vld [vmem:[#allocation2 + $0x18] sm:$0xff]  ;;  %3190 = vmatprep.subr.mxu0 %v3566_v1 }
 0x166   :  { %3112 = vmatmul.mubr.msk.f32.gmra.mxu1 %vm224_vm8, %v234_v54  ;;  %3155 = vmatmul.mubr.msk.f32.gmra.mxu0 %vm224_vm8, %v467_v53  ;;  %v352_v60 = vld [vmem:[#allocation2 + $0x11] sm:$0xff]  ;;  %v3733_v53 = vld [vmem:[#allocation3 + $0xc0] sm:$0xff] }
 0x167   :  { %3114 = vmatprep.mubr.msk.f32.mxu1 %vm3567_vm0, %v3566_v1  ;;  %3157 = vmatprep.mubr.msk.f32.mxu0 %vm3567_vm0, %v3566_v1 }
 0x168   :  { %v235_v55 = vld [vmem:[#allocation2 + $0x20] sm:$0x3]  ;;  %v469_v58 = vld [vmem:[#allocation2 + $0x22] sm:$0x3]  ;;  %3191 = vmatpush3.msra.mxu0 %v3717_v5 }
 0x169   :  { %v468_v56 = vld [vmem:[#allocation2 + $0x1a] sm:$0xff]  ;;  %3192 = vmatprep.subr.mxu0 %v3566_v1 }
 0x16a   :  { %3115 = vmatmul.mubr.msk.f32.gmra.mxu1 %vm224_vm8, %v235_v55  ;;  %3158 = vmatmul.mubr.msk.f32.gmra.mxu0 %vm224_vm8, %v468_v56  ;;  %v353_v61 = vld [vmem:[#allocation2 + $0x19] sm:$0xff]  ;;  %v354_v62 = vld [vmem:[#allocation2 + $0x21] sm:$0x3] }
 0x16b   :  { %3125 = vmatprep.mubr.msk.f32.mxu1 %vm3567_vm0, %v3566_v1  ;;  %3160 = vmatprep.mubr.msk.f32.mxu0 %vm3567_vm0, %v3566_v1 }
 0x16c   :  { %3193 = vmatpush3.msra.mxu0 %v3725_v7 }
 0x16d   :  { %3232 = vmatprep.subr.mxu0 %v3566_v1 }
 0x16e   :  { %3126 = vmatmul.mubr.msk.f32.vlgmr.msra.gmra.mxu1 %vm224_vm8, %v350_v57  ;;  %3161 = vmatmul.mubr.msk.f32.gmra.mxu0 %vm224_vm8, %v469_v58 }
 0x16f   :  { %3128 = vmatprep.mubr.msk.f32.mxu1 %vm3567_vm0, %v3566_v1  ;;  %3194 = vmatprep.mubr.msk.f32.mxu0 %vm3567_vm0, %v3566_v1 }
 0x170   :  { %3164 = vmatpush3.msra.mxu1 %v3699_v63 }
 0x171   :  { %3165 = vmatprep.subr.mxu1 %v3566_v1 }
 0x172   :  { %3129 = vmatmul.mubr.msk.f32.gmra.mxu1 %vm224_vm8, %v351_v59 }
 0x173   :  { %3131 = vmatprep.mubr.msk.f32.mxu1 %vm3567_vm0, %v3566_v1  ;;  %3166 = vmatpush3.msra.mxu1 %v3707_v2 }
 0x174   :  { %3167 = vmatprep.subr.mxu1 %v3566_v1 }
 0x175   :  { %3168 = vmatpush3.msra.mxu1 %v3715_v4 }
 0x176   :  { %3132 = vmatmul.mubr.msk.f32.gmra.mxu1 %vm224_vm8, %v352_v60  ;;  %3169 = vmatprep.subr.mxu1 %v3566_v1 }
 0x177   :  { %3134 = vmatprep.mubr.msk.f32.mxu1 %vm3567_vm0, %v3566_v1  ;;  %3170 = vmatpush3.msra.mxu1 %v3723_v6 }
 0x178   :  { %3209 = vmatprep.subr.mxu1 %v3566_v1 }
 0x17a   :  { %3135 = vmatmul.mubr.msk.f32.gmra.mxu1 %vm224_vm8, %v353_v61 }
 0x17b   :  { %3137 = vmatprep.mubr.msk.f32.mxu1 %vm3567_vm0, %v3566_v1 }
 0x17e   :  { %3138 = vmatmul.mubr.msk.f32.gmra.mxu1 %vm224_vm8, %v354_v62  ;;  %v3747_v62 = vld [vmem:[#allocation3 + $0xb8] sm:$0xff] }
 0x17f   :  { %3171 = vmatprep.mubr.msk.f32.mxu1 %vm3567_vm0, %v3566_v1 }
 0x219   :  { %v317_v8 = vpop.f32.mrf.mxu1 }
 0x21a   :  { %v345_v27 = vadd.f32 %v2794_v22, %v317_v8 }
 0x21b   :  { %v3104_v9 = vpop.f32.mrf.mxu1 }
 0x21d   :  { %v551_v11 = vpop.f32.mrf.mxu0 }
 0x21e   :  { %v322_v10 = vpop.f32.mrf.mxu1 }
 0x21f   :  { %v3150_v13 = vpop.f32.mrf.mxu0  ;;  %v346_v33 = vadd.f32 %v2794_v22, %v322_v10 }
 0x220   :  { %v3107_v12 = vpop.f32.mrf.mxu1 }
 0x221   :  { %v3768_v12 = vld [vmem:[#allocation3 + $0xa8] sm:$0xff] }
 0x222   :  { %v327_v14 = vpop.f32.mrf.mxu1  ;;  %v556_v15 = vpop.f32.mrf.mxu0 }
 0x223   :  { %v347_v39 = vadd.f32 %v2794_v22, %v327_v14 }
 0x224   :  { %v3110_v16 = vpop.f32.mrf.mxu1  ;;  %v3153_v17 = vpop.f32.mrf.mxu0 }
 0x226   :  { %v332_v18 = vpop.f32.mrf.mxu1  ;;  %v561_v19 = vpop.f32.mrf.mxu0 }
 0x227   :  { %v348_v45 = vadd.f32 %v2794_v22, %v332_v18 }
 0x228   :  { %v3113_v20 = vpop.f32.mrf.mxu1  ;;  %v3156_v21 = vpop.f32.mrf.mxu0 }
 0x22a   :  { %v337_v23 = vpop.f32.mrf.mxu1  ;;  %v566_v24 = vpop.f32.mrf.mxu0 }
 0x22b   :  { %v349_v54 = vadd.f32 %v2794_v22, %v337_v23 }
 0x22c   :  { %v3116_v25 = vpop.f32.mrf.mxu1  ;;  %v3159_v26 = vpop.f32.mrf.mxu0 }
 0x22e   :  { %v436_v28 = vpop.f32.mrf.mxu1  ;;  %v571_v29 = vpop.f32.mrf.mxu0 }
 0x22f   :  { %v460_v30 = vadd.f32 %v436_v28, %v345_v27  ;;  %v3815_v27 = vld [vmem:[#allocation3 + $0xc8] ss:$0 sm:$0xff] }
 0x230   :  { %v3127_v31 = vpop.f32.mrf.mxu1  ;;  %v3162_v32 = vpop.f32.mrf.mxu0 }
 0x231   :  { %v575_v34 = vadd.f32 %v551_v11, %v460_v30 }
 0x232   :  { %v441_v35 = vpop.f32.mrf.mxu1 }
 0x233   :  { %v580_v36 = vmax.f32 %v575_v34, 0.0  ;;  %v461_v37 = vadd.f32 %v441_v35, %v346_v33 }
 0x234   :  { %v3130_v38 = vpop.f32.mrf.mxu1 }
 0x235   :  { %585 = vst.msk [vmem:[#allocation2 + $0x1] sm:$0xff] %vm224_vm8, %v580_v36  ;;  %v576_v40 = vadd.f32 %v556_v15, %v461_v37 }
 0x236   :  { %v446_v41 = vpop.f32.mrf.mxu1 }
 0x237   :  { %v581_v42 = vmax.f32 %v576_v40, 0.0  ;;  %v462_v43 = vadd.f32 %v446_v41, %v347_v39 }
 0x238   :  { %v3133_v44 = vpop.f32.mrf.mxu1 }
 0x239   :  { %586 = vst.msk [vmem:[#allocation2 + $0x9] sm:$0xff] %vm224_vm8, %v581_v42  ;;  %v577_v46 = vadd.f32 %v561_v19, %v462_v43 }
 0x23a   :  { %v451_v47 = vpop.f32.mrf.mxu1 }
 0x23b   :  { %v582_v48 = vmax.f32 %v577_v46, 0.0  ;;  %v463_v49 = vadd.f32 %v451_v47, %v348_v45 }
 0x23c   :  { %v3136_v50 = vpop.f32.mrf.mxu1  ;;  %v592_v51 = vld [vmem:[#allocation2] sm:$0xff] }
 0x23d   :  { %v711_v52 = vld [vmem:[#allocation2 + $0x1] sm:$0xff]  ;;  %587 = vst.msk [vmem:[#allocation2 + $0x11] sm:$0xff] %vm224_vm8, %v582_v48  ;;  %v578_v55 = vadd.f32 %v566_v24, %v463_v49  ;;  %3172 = vmatmul.mubr.msk.f32.vlgmr.msra.gmra.mxu1 %vm224_vm8, %v592_v51 }
 0x23e   :  { %3195 = vmatmul.mubr.msk.f32.vlgmr.msra.gmra.mxu0 %vm224_vm8, %v711_v52  ;;  %v456_v56 = vpop.f32.mrf.mxu1  ;;  %591 = vst.msk [vmem:[#allocation2 + $0x11] sm:$0x3] %vm589_vm10, %v3566_v1  ;;  %3174 = vmatprep.mubr.msk.f32.mxu1 %vm3567_vm0, %v3566_v1 }
 0x23f   :  { %3197 = vmatprep.mubr.msk.f32.mxu0 %vm3567_vm0, %v3566_v1  ;;  %v583_v57 = vmax.f32 %v578_v55, 0.0  ;;  %v464_v58 = vadd.f32 %v456_v56, %v349_v54  ;;  %3210 = vmatpush3.msra.mxu1 %v3733_v53 }
 0x240   :  { %3233 = vmatpush3.msra.mxu0 %v3699_v63  ;;  %v3139_v59 = vpop.f32.mrf.mxu1  ;;  %v593_v60 = vld [vmem:[#allocation2 + $0x8] sm:$0xff]  ;;  %3211 = vmatprep.subr.mxu1 %v3566_v1  ;;  %v3757_v63 = vld [vmem:[#allocation3 + $0xb0] sm:$0xff] }
 0x241   :  { %v712_v61 = vld [vmem:[#allocation2 + $0x9] sm:$0xff]  ;;  %3234 = vmatprep.subr.mxu0 %v3566_v1  ;;  %588 = vst.msk [vmem:[#allocation2 + $0x19] sm:$0xff] %vm224_vm8, %v583_v57  ;;  %v579_v8 = vadd.f32 %v571_v29, %v464_v58  ;;  %3175 = vmatmul.mubr.msk.f32.gmra.mxu1 %vm224_vm8, %v593_v60 }
 0x242   :  { %3198 = vmatmul.mubr.msk.f32.gmra.mxu0 %vm224_vm8, %v712_v61  ;;  %3177 = vmatprep.mubr.msk.f32.mxu1 %vm3567_vm0, %v3566_v1 }
 0x243   :  { %3200 = vmatprep.mubr.msk.f32.mxu0 %vm3567_vm0, %v3566_v1  ;;  %v584_v9 = vmax.f32 %v579_v8, 0.0  ;;  %3212 = vmatpush3.msra.mxu1 %v3747_v62  ;;  %v3568_v8 = vmov -inf  }
 0x244   :  { %3235 = vmatpush3.msra.mxu0 %v3707_v2  ;;  %3213 = vmatprep.subr.mxu1 %v3566_v1 }
 0x245   :  { %3236 = vmatprep.subr.mxu0 %v3566_v1  ;;  %590 = vst.msk [vmem:[#allocation2 + $0x21] sm:$0x3] %vm589_vm10, %v584_v9  ;;  %v594_v10 = vld [vmem:[#allocation2 + $0x10] sm:$0xff]  ;;  %3214 = vmatpush3.msra.mxu1 %v3757_v63 }
 0x246   :  { %v713_v11 = vld [vmem:[#allocation2 + $0x11] sm:$0xff]  ;;  %3237 = vmatpush3.msra.mxu0 %v3715_v4  ;;  %3178 = vmatmul.mubr.msk.f32.gmra.mxu1 %vm224_vm8, %v594_v10 }
 0x247   :  { %3201 = vmatmul.mubr.msk.f32.gmra.mxu0 %vm224_vm8, %v713_v11  ;;  %3180 = vmatprep.mubr.msk.f32.mxu1 %vm3567_vm0, %v3566_v1  ;;  %v827_v15 = vld [vmem:[#allocation2 + $0xa] sm:$0xff] }
 0x248   :  { %3203 = vmatprep.mubr.msk.f32.mxu0 %vm3567_vm0, %v3566_v1  ;;  %v595_v2 = vld [vmem:[#allocation2 + $0x18] sm:$0xff]  ;;  %3215 = vmatprep.subr.mxu1 %v3566_v1 }
 0x249   :  { %v714_v13 = vld [vmem:[#allocation2 + $0x19] sm:$0xff]  ;;  %3238 = vmatprep.subr.mxu0 %v3566_v1  ;;  %3216 = vmatpush3.msra.mxu1 %v3768_v12 }
 0x24a   :  { %3239 = vmatpush3.msra.mxu0 %v3723_v6  ;;  %3181 = vmatmul.mubr.msk.f32.gmra.mxu1 %vm224_vm8, %v595_v2  ;;  %v826_v6 = vld [vmem:[#allocation2 + $0x2] sm:$0xff]  ;;  %v828_v16 = vld [vmem:[#allocation2 + $0x12] sm:$0xff] }
 0x24b   :  { %3204 = vmatmul.mubr.msk.f32.gmra.mxu0 %vm224_vm8, %v714_v13  ;;  %3183 = vmatprep.mubr.msk.f32.mxu1 %vm3567_vm0, %v3566_v1 }
 0x24c   :  { %3206 = vmatprep.mubr.msk.f32.mxu0 %vm3567_vm0, %v3566_v1  ;;  %v596_v4 = vld [vmem:[#allocation2 + $0x20] sm:$0x3]  ;;  %3255 = vmatprep.subr.mxu1 %v3566_v1 }
 0x24d   :  { %v715_v14 = vld [vmem:[#allocation2 + $0x21] sm:$0x3]  ;;  %3278 = vmatprep.subr.mxu0 %v3566_v1 }
 0x24e   :  { %3184 = vmatmul.mubr.msk.f32.gmra.mxu1 %vm224_vm8, %v596_v4 }
 0x24f   :  { %3207 = vmatmul.mubr.msk.f32.gmra.mxu0 %vm224_vm8, %v715_v14  ;;  %3217 = vmatprep.mubr.msk.f32.mxu1 %vm3567_vm0, %v3566_v1 }
 0x250   :  { %3240 = vmatprep.mubr.msk.f32.mxu0 %vm3567_vm0, %v3566_v1 }
 0x252   :  { %3218 = vmatmul.mubr.msk.f32.vlgmr.msra.gmra.mxu1 %vm224_vm8, %v826_v6 }
 0x253   :  { %3220 = vmatprep.mubr.msk.f32.mxu1 %vm3567_vm0, %v3566_v1  ;;  %3256 = vmatpush3.msra.mxu1 %v3701_v0  ;;  %v829_v0 = vld [vmem:[#allocation2 + $0x1a] sm:$0xff] }
 0x254   :  { %3257 = vmatprep.subr.mxu1 %v3566_v1 }
 0x255   :  { %3258 = vmatpush3.msra.mxu1 %v3709_v3  ;;  %v830_v3 = vld [vmem:[#allocation2 + $0x22] sm:$0x3] }
 0x256   :  { %3221 = vmatmul.mubr.msk.f32.gmra.mxu1 %vm224_vm8, %v827_v15  ;;  %3259 = vmatprep.subr.mxu1 %v3566_v1 }
 0x257   :  { %3223 = vmatprep.mubr.msk.f32.mxu1 %vm3567_vm0, %v3566_v1  ;;  %3260 = vmatpush3.msra.mxu1 %v3717_v5 }
 0x258   :  { %3261 = vmatprep.subr.mxu1 %v3566_v1 }
 0x259   :  { %3262 = vmatpush3.msra.mxu1 %v3725_v7 }
 0x25a   :  { %3224 = vmatmul.mubr.msk.f32.gmra.mxu1 %vm224_vm8, %v828_v16  ;;  %3301 = vmatprep.subr.mxu1 %v3566_v1 }
 0x25b   :  { %3226 = vmatprep.mubr.msk.f32.mxu1 %vm3567_vm0, %v3566_v1 }
 0x25e   :  { %3227 = vmatmul.mubr.msk.f32.gmra.mxu1 %vm224_vm8, %v829_v0 }
 0x25f   :  { %3229 = vmatprep.mubr.msk.f32.mxu1 %vm3567_vm0, %v3566_v1 }
 0x262   :  { %3230 = vmatmul.mubr.msk.f32.gmra.mxu1 %vm224_vm8, %v830_v3 }
 0x263   :  { %3263 = vmatprep.mubr.msk.f32.mxu1 %vm3567_vm0, %v3566_v1 }
 0x2fd   :  { %v678_v5 = vpop.f32.mrf.mxu1 }
 0x2fe   :  { %v797_v7 = vpop.f32.mrf.mxu0  ;;  %v706_v32 = vadd.f32 %v3815_v27, %v678_v5 }
 0x2ff   :  { %v3173_v17 = vpop.f32.mrf.mxu1 }
 0x300   :  { %v3196_v18 = vpop.f32.mrf.mxu0  ;;  %v821_v37 = vadd.f32 %v797_v7, %v706_v32 }
 0x301   :  { %v683_v19 = vpop.f32.mrf.mxu1 }
 0x302   :  { %v802_v20 = vpop.f32.mrf.mxu0  ;;  %v707_v38 = vadd.f32 %v3815_v27, %v683_v19 }
 0x303   :  { %v3176_v21 = vpop.f32.mrf.mxu1 }
 0x304   :  { %v3199_v22 = vpop.f32.mrf.mxu0  ;;  %v822_v42 = vadd.f32 %v802_v20, %v707_v38 }
 0x306   :  { %v688_v23 = vpop.f32.mrf.mxu1 }
 0x307   :  { %v807_v24 = vpop.f32.mrf.mxu0  ;;  %v708_v43 = vadd.f32 %v3815_v27, %v688_v23 }
 0x308   :  { %v3179_v25 = vpop.f32.mrf.mxu1 }
 0x309   :  { %v3202_v26 = vpop.f32.mrf.mxu0  ;;  %v823_v48 = vadd.f32 %v807_v24, %v708_v43 }
 0x30a   :  { %v693_v28 = vpop.f32.mrf.mxu1 }
 0x30b   :  { %v812_v29 = vpop.f32.mrf.mxu0  ;;  %v709_v49 = vadd.f32 %v3815_v27, %v693_v28 }
 0x30c   :  { %v3182_v30 = vpop.f32.mrf.mxu1 }
 0x30d   :  { %v3205_v31 = vpop.f32.mrf.mxu0  ;;  %v824_v55 = vadd.f32 %v812_v29, %v709_v49 }
 0x30e   :  { %v698_v33 = vpop.f32.mrf.mxu1 }
 0x30f   :  { %v817_v34 = vpop.f32.mrf.mxu0  ;;  %v710_v56 = vadd.f32 %v3815_v27, %v698_v33 }
 0x310   :  { %v3185_v35 = vpop.f32.mrf.mxu1 }
 0x311   :  { %v3208_v36 = vpop.f32.mrf.mxu0  ;;  %v825_v10 = vadd.f32 %v817_v34, %v710_v56 }
 0x312   :  { %v912_v39 = vpop.f32.mrf.mxu1 }
 0x313   :  { %v936_v40 = vadd.f32 %v912_v39, %v821_v37 }
 0x314   :  { %v3219_v41 = vpop.f32.mrf.mxu1 }
 0x315   :  { %v941_v44 = vmax.f32 %v936_v40, 0.0 }
 0x316   :  { %v917_v45 = vpop.f32.mrf.mxu1 }
 0x317   :  { %946 = vst.msk [vmem:[#allocation2 + $0x1] sm:$0xff] %vm224_vm8, %v941_v44  ;;  %v937_v46 = vadd.f32 %v917_v45, %v822_v42 }
 0x318   :  { %v3222_v47 = vpop.f32.mrf.mxu1 }
 0x319   :  { %v942_v50 = vmax.f32 %v937_v46, 0.0 }
 0x31a   :  { %v922_v51 = vpop.f32.mrf.mxu1 }
 0x31b   :  { %947 = vst.msk [vmem:[#allocation2 + $0x9] sm:$0xff] %vm224_vm8, %v942_v50  ;;  %v938_v52 = vadd.f32 %v922_v51, %v823_v48 }
 0x31c   :  { %v3225_v54 = vpop.f32.mrf.mxu1 }
 0x31d   :  { %v943_v57 = vmax.f32 %v938_v52, 0.0 }
 0x31e   :  { %v927_v58 = vpop.f32.mrf.mxu1  ;;  %v952_v59 = vld [vmem:[#allocation2] sm:$0xff] }
 0x31f   :  { %v1067_v60 = vld [vmem:[#allocation2 + $0x1] sm:$0xff]  ;;  %948 = vst.msk [vmem:[#allocation2 + $0x11] sm:$0xff] %vm224_vm8, %v943_v57  ;;  %v939_v61 = vadd.f32 %v927_v58, %v824_v55  ;;  %3241 = vmatmul.mubr.msk.f32.vlgmr.msra.gmra.mxu0 %vm224_vm8, %v952_v59 }
 0x320   :  { %1303 = vst.msk [vmem:[#allocation2] sm:$0x1] %vm1302_vm11, %v3568_v8  ;;  %3264 = vmatmul.mubr.msk.f32.vlgmr.msra.gmra.mxu1 %vm224_vm8, %v1067_v60  ;;  %v3228_v9 = vpop.f32.mrf.mxu1  ;;  %3243 = vmatprep.mubr.msk.f32.mxu0 %vm3567_vm0, %v3566_v1 }
 0x321   :  { %951 = vst.msk [vmem:[#allocation2 + $0x11] sm:$0x3] %vm589_vm10, %v3566_v1  ;;  %3266 = vmatprep.mubr.msk.f32.mxu1 %vm3567_vm0, %v3566_v1  ;;  %v944_v11 = vmax.f32 %v939_v61, 0.0  ;;  %3279 = vmatpush3.msra.mxu0 %v3733_v53 }
 0x322   :  { %v932_v2 = vpop.f32.mrf.mxu1  ;;  %v953_v13 = vld [vmem:[#allocation2 + $0x8] sm:$0xff]  ;;  %3280 = vmatprep.subr.mxu0 %v3566_v1 }
 0x323   :  { %v1068_v4 = vld [vmem:[#allocation2 + $0x9] sm:$0xff]  ;;  %949 = vst.msk [vmem:[#allocation2 + $0x19] sm:$0xff] %vm224_vm8, %v944_v11  ;;  %v940_v14 = vadd.f32 %v932_v2, %v825_v10  ;;  %3244 = vmatmul.mubr.msk.f32.gmra.mxu0 %vm224_vm8, %v953_v13 }
 0x324   :  { %3267 = vmatmul.mubr.msk.f32.gmra.mxu1 %vm224_vm8, %v1068_v4  ;;  %v3231_v6 = vpop.f32.mrf.mxu1  ;;  %3246 = vmatprep.mubr.msk.f32.mxu0 %vm3567_vm0, %v3566_v1 }
 0x325   :  { %3269 = vmatprep.mubr.msk.f32.mxu1 %vm3567_vm0, %v3566_v1  ;;  %v945_v53 = vmax.f32 %v940_v14, 0.0  ;;  %3281 = vmatpush3.msra.mxu0 %v3747_v62 }
 0x326   :  { %3282 = vmatprep.subr.mxu0 %v3566_v1 }
 0x327   :  { %950 = vst.msk [vmem:[#allocation2 + $0x21] sm:$0x3] %vm589_vm10, %v945_v53  ;;  %3283 = vmatpush3.msra.mxu0 %v3757_v63 }
 0x328   :  { %v954_v15 = vld [vmem:[#allocation2 + $0x10] sm:$0xff]  ;;  %3284 = vmatprep.subr.mxu0 %v3566_v1 }
 0x329   :  { %v1069_v16 = vld [vmem:[#allocation2 + $0x11] sm:$0xff]  ;;  %3247 = vmatmul.mubr.msk.f32.gmra.mxu0 %vm224_vm8, %v954_v15 }
 0x32a   :  { %3270 = vmatmul.mubr.msk.f32.gmra.mxu1 %vm224_vm8, %v1069_v16  ;;  %3249 = vmatprep.mubr.msk.f32.mxu0 %vm3567_vm0, %v3566_v1  ;;  %v955_v0 = vld [vmem:[#allocation2 + $0x18] sm:$0xff]  ;;  %v1183_v5 = vld [vmem:[#allocation2 + $0xa] sm:$0xff] }
 0x32b   :  { %3272 = vmatprep.mubr.msk.f32.mxu1 %vm3567_vm0, %v3566_v1  ;;  %v1070_v62 = vld [vmem:[#allocation2 + $0x19] sm:$0xff]  ;;  %3285 = vmatpush3.msra.mxu0 %v3768_v12  ;;  %v1182_v12 = vld [vmem:[#allocation2 + $0x2] sm:$0xff] }
 0x32c   :  { %3320 = vmatprep.subr.mxu0 %v3566_v1  ;;  %v1184_v7 = vld [vmem:[#allocation2 + $0x12] sm:$0xff] }
 0x32d   :  { %3250 = vmatmul.mubr.msk.f32.gmra.mxu0 %vm224_vm8, %v955_v0 }
 0x32e   :  { %3273 = vmatmul.mubr.msk.f32.gmra.mxu1 %vm224_vm8, %v1070_v62  ;;  %3252 = vmatprep.mubr.msk.f32.mxu0 %vm3567_vm0, %v3566_v1  ;;  %v956_v63 = vld [vmem:[#allocation2 + $0x20] sm:$0x3]  ;;  %v1186_v18 = vld [vmem:[#allocation2 + $0x22] sm:$0x3] }
 0x32f   :  { %3275 = vmatprep.mubr.msk.f32.mxu1 %vm3567_vm0, %v3566_v1  ;;  %v1071_v3 = vld [vmem:[#allocation2 + $0x21] sm:$0x3] }
 0x330   :  { %v1185_v17 = vld [vmem:[#allocation2 + $0x1a] sm:$0xff] }
 0x331   :  { %3253 = vmatmul.mubr.msk.f32.gmra.mxu0 %vm224_vm8, %v956_v63 }
 0x332   :  { %3276 = vmatmul.mubr.msk.f32.gmra.mxu1 %vm224_vm8, %v1071_v3  ;;  %3286 = vmatprep.mubr.msk.f32.mxu0 %vm3567_vm0, %v3566_v1 }
 0x333   :  { %3311 = vmatprep.mubr.msk.f32.mxu1 %vm3567_vm0, %v3566_v1 }
 0x335   :  { %3287 = vmatmul.mubr.msk.f32.vlgmr.msra.gmra.mxu0 %vm224_vm8, %v1182_v12 }
 0x336   :  { %3289 = vmatprep.mubr.msk.f32.mxu0 %vm3567_vm0, %v3566_v1 }
 0x339   :  { %3290 = vmatmul.mubr.msk.f32.gmra.mxu0 %vm224_vm8, %v1183_v5 }
 0x33a   :  { %3292 = vmatprep.mubr.msk.f32.mxu0 %vm3567_vm0, %v3566_v1 }
 0x33d   :  { %3293 = vmatmul.mubr.msk.f32.gmra.mxu0 %vm224_vm8, %v1184_v7 }
 0x33e   :  { %3295 = vmatprep.mubr.msk.f32.mxu0 %vm3567_vm0, %v3566_v1 }
 0x341   :  { %3296 = vmatmul.mubr.msk.f32.gmra.mxu0 %vm224_vm8, %v1185_v17 }
 0x342   :  { %3298 = vmatprep.mubr.msk.f32.mxu0 %vm3567_vm0, %v3566_v1 }
 0x345   :  { %3299 = vmatmul.mubr.msk.f32.gmra.mxu0 %vm224_vm8, %v1186_v18 }
 0x346   :  { %3328 = vmatprep.mubr.msk.f32.mxu0 %vm3567_vm0, %v3566_v1 }
 0x3df   :  { %v1038_v19 = vpop.f32.mrf.mxu0 }
 0x3e0   :  { %v1153_v20 = vpop.f32.mrf.mxu1  ;;  %v1062_v36 = vadd.f32 %v3815_v27, %v1038_v19 }
 0x3e1   :  { %v3242_v21 = vpop.f32.mrf.mxu0 }
 0x3e2   :  { %v3265_v22 = vpop.f32.mrf.mxu1  ;;  %v1177_v41 = vadd.f32 %v1153_v20, %v1062_v36  ;;  %v3926_v36 = vld [vmem:[#allocation3 + $0x100] sm:$0xff] }
 0x3e3   :  { %v1043_v23 = vpop.f32.mrf.mxu0 }
 0x3e4   :  { %v1158_v24 = vpop.f32.mrf.mxu1  ;;  %v1063_v42 = vadd.f32 %v3815_v27, %v1043_v23 }
 0x3e5   :  { %v3245_v25 = vpop.f32.mrf.mxu0 }
 0x3e6   :  { %v3268_v26 = vpop.f32.mrf.mxu1  ;;  %v1178_v46 = vadd.f32 %v1158_v24, %v1063_v42 }
 0x3e9   :  { %v1048_v28 = vpop.f32.mrf.mxu0 }
 0x3ea   :  { %v1163_v29 = vpop.f32.mrf.mxu1  ;;  %v1064_v47 = vadd.f32 %v3815_v27, %v1048_v28  ;;  %v1330_v28 = vld [vmem:[#allocation3 + $0x160] sm:$0xff] }
 0x3eb   :  { %v3248_v30 = vpop.f32.mrf.mxu0 }
 0x3ec   :  { %v3271_v31 = vpop.f32.mrf.mxu1  ;;  %v1179_v51 = vadd.f32 %v1163_v29, %v1064_v47  ;;  %v1331_v29 = vld [vmem:[#allocation3 + $0x168] sm:$0xff]  ;;  %v1332_v30 = vld [vmem:[#allocation3 + $0x170] sm:$0xf] }
 0x3ed   :  { %v1053_v32 = vpop.f32.mrf.mxu0  ;;  %v3908_v31 = vld [vmem:[#allocation3 + $0xe8] sm:$0xff] }
 0x3ee   :  { %v1168_v33 = vpop.f32.mrf.mxu1  ;;  %v1065_v52 = vadd.f32 %v3815_v27, %v1053_v32  ;;  %3321 = vmatpush3.msra.mxu0 %v3908_v31  ;;  %v3912_v32 = vld [vmem:[#allocation3 + $0xe0] sm:$0xff]  ;;  %v3951_v47 = vld [vmem:[#allocation3 + $0x128] sm:$0xff] }
 0x3ef   :  { %v3251_v34 = vpop.f32.mrf.mxu0  ;;  %3322 = vmatprep.subr.mxu0 %v3566_v1 }
 0x3f0   :  { %v3274_v35 = vpop.f32.mrf.mxu1  ;;  %v1180_v57 = vadd.f32 %v1168_v33, %v1065_v52  ;;  %3323 = vmatpush3.msra.mxu0 %v3912_v32  ;;  %v3916_v33 = vld [vmem:[#allocation3 + $0xd8] sm:$0xff]  ;;  %v3918_v34 = vld [vmem:[#allocation3 + $0x108] sm:$0xff] }
 0x3f1   :  { %v1058_v37 = vpop.f32.mrf.mxu0  ;;  %3324 = vmatprep.subr.mxu0 %v3566_v1  ;;  %v3924_v35 = vld [vmem:[#allocation3 + $0xd0] sm:$0xff] }
 0x3f2   :  { %v1173_v38 = vpop.f32.mrf.mxu1  ;;  %v1066_v58 = vadd.f32 %v3815_v27, %v1058_v37  ;;  %3325 = vmatpush3.msra.mxu0 %v3916_v33  ;;  %v3930_v37 = vld [vmem:[#allocation3 + $0xf8] sm:$0xff] }
 0x3f3   :  { %v3254_v39 = vpop.f32.mrf.mxu0  ;;  %3326 = vmatprep.subr.mxu0 %v3566_v1 }
 0x3f4   :  { %v3277_v40 = vpop.f32.mrf.mxu1  ;;  %v1181_v9 = vadd.f32 %v1173_v38, %v1066_v58  ;;  %3327 = vmatpush3.msra.mxu0 %v3924_v35  ;;  %v3933_v38 = vld [vmem:[#allocation3 + $0xf0] sm:$0xff] }
 0x3f5   :  { %v1268_v43 = vpop.f32.mrf.mxu0  ;;  %3354 = vmatprep.subr.mxu0 %v3566_v1 }
 0x3f6   :  { %v1292_v44 = vadd.f32 %v1268_v43, %v1177_v41 }
 0x3f7   :  { %v3288_v45 = vpop.f32.mrf.mxu0 }
 0x3f8   :  { %1297 = vst.msk [vmem:[#allocation2 + $0x1] sm:$0xff] %vm224_vm8, %v1292_v44 }
 0x3f9   :  { %v1273_v48 = vpop.f32.mrf.mxu0 }
 0x3fa   :  { %v1293_v49 = vadd.f32 %v1273_v48, %v1178_v46 }
 0x3fb   :  { %v3291_v50 = vpop.f32.mrf.mxu0 }
 0x3fc   :  { %1298 = vst.msk [vmem:[#allocation2 + $0x9] sm:$0xff] %vm224_vm8, %v1293_v49  ;;  %v3955_v50 = vld [vmem:[#allocation3 + $0x120] sm:$0xff] }
 0x3fd   :  { %v1278_v54 = vpop.f32.mrf.mxu0 }
 0x3fe   :  { %v1294_v55 = vadd.f32 %v1278_v54, %v1179_v51  ;;  %v3964_v54 = vld [vmem:[#allocation3 + $0x118] sm:$0xff] }
 0x3ff   :  { %v3294_v56 = vpop.f32.mrf.mxu0  ;;  %v1305_v19 = vld [vmem:[#allocation2] sm:$0xff] }
 0x400   :  { %1299 = vst.msk [vmem:[#allocation2 + $0x11] sm:$0xff] %vm224_vm8, %v1294_v55  ;;  %v1310_v20 = vld [vmem:[#allocation2 + $0x1] sm:$0xff] }
 0x401   :  { %1304 = vst.msk [vmem:[#allocation2 + $0x12] sm:$0x1] %vm1302_vm11, %v3568_v8  ;;  %v1283_v59 = vpop.f32.mrf.mxu0  ;;  %v1320_v25 = vmax.f32 %v1305_v19, %v1310_v20 }
 0x402   :  { %v1295_v60 = vadd.f32 %v1283_v59, %v1180_v57  ;;  %v3973_v57 = vld [vmem:[#allocation3 + $0x110] sm:$0xff] }
 0x403   :  { %v3297_v61 = vpop.f32.mrf.mxu0  ;;  %v1306_v5 = vld [vmem:[#allocation2 + $0x8] sm:$0xff] }
 0x404   :  { %1300 = vst.msk [vmem:[#allocation2 + $0x19] sm:$0xff] %vm224_vm8, %v1295_v60  ;;  %v1311_v7 = vld [vmem:[#allocation2 + $0x9] sm:$0xff] }
 0x405   :  { %v1288_v10 = vpop.f32.mrf.mxu0  ;;  %v1321_v22 = vmax.f32 %v1306_v5, %v1311_v7  ;;  %v1315_v23 = vld [vmem:[#allocation2 + $0x2] sm:$0xff] }
 0x406   :  { %v1296_v11 = vadd.f32 %v1288_v10, %v1181_v9  ;;  %v1325_v26 = vmax.f32 %v1320_v25, %v1315_v23 }
 0x407   :  { %v3300_v2 = vpop.f32.mrf.mxu0  ;;  %v1316_v18 = vld [vmem:[#allocation2 + $0xa] sm:$0xff] }
 0x408   :  { %1301 = vst.msk [vmem:[#allocation2 + $0x21] sm:$0x3] %vm589_vm10, %v1296_v11  ;;  %v1307_v4 = vld [vmem:[#allocation2 + $0x10] sm:$0xff]  ;;  %v1326_v24 = vmax.f32 %v1321_v22, %v1316_v18 }
 0x409   :  { %v1312_v14 = vld [vmem:[#allocation2 + $0x11] sm:$0xff] }
 0x40a   :  { %v1322_v3 = vmax.f32 %v1307_v4, %v1312_v14 }
 0x40b   :  { %v1308_v13 = vld [vmem:[#allocation2 + $0x18] sm:$0xff] }
 0x40c   :  { %v1313_v53 = vld [vmem:[#allocation2 + $0x19] sm:$0xff] }
 0x40d   :  { %v1323_v63 = vmax.f32 %v1308_v13, %v1313_v53  ;;  %v1317_v12 = vld [vmem:[#allocation2 + $0x12] sm:$0xff] }
 0x40e   :  { %v1327_v21 = vmax.f32 %v1322_v3, %v1317_v12  ;;  %v4010_v13 = vld [vmem:[#allocation3 + $0x130] ss:$0 sm:$0xff] }
 0x40f   :  { %v1309_v27 = vld [vmem:[#allocation2 + $0x20] sm:$0x3]  ;;  %v1319_v16 = vld [vmem:[#allocation2 + $0x22] sm:$0x3] }
 0x410   :  { %v1314_v6 = vld [vmem:[#allocation2 + $0x21] sm:$0x3] }
 0x411   :  { %v1324_v15 = vmax.f32 %v1309_v27, %v1314_v6  ;;  %v1318_v0 = vld [vmem:[#allocation2 + $0x1a] sm:$0xff] }
 0x412   :  { %v1328_v17 = vmax.f32 %v1323_v63, %v1318_v0 }
 0x413   :  { %v1329_v62 = vmax.f32 %v1324_v15, %v1319_v16 }
 0x415   :  { %3302 = vmatpush3.msk.msra.mxu1 %vm130_vm1, %v1329_v62 }
 0x416   :  { %3303 = vmatprep.subr.mxu1 %v3566_v1 }
 0x417   :  { %3304 = vmatpush3.msra.mxu1 %v1328_v17 }
 0x418   :  { %3305 = vmatprep.subr.mxu1 %v3566_v1 }
 0x419   :  { %3306 = vmatpush3.msra.mxu1 %v1327_v21 }
 0x41a   :  { %3307 = vmatprep.subr.mxu1 %v3566_v1 }
 0x41b   :  { %3308 = vmatpush3.msra.mxu1 %v1326_v24 }
 0x41c   :  { %3309 = vmatprep.subr.mxu1 %v3566_v1 }
 0x41d   :  { %3310 = vmatpush3.msra.mxu1 %v1325_v26 }
 0x41e   :  { %3312 = vmatmul.mubr.msk.f32.vlgmr.msra.gmra.mxu1 %vm1333_vm12, %v1330_v28  ;;  %3337 = vmatprep.subr.mxu1 %v3566_v1 }
 0x41f   :  { %3314 = vmatprep.mubr.msk.f32.mxu1 %vm3567_vm0, %v3566_v1  ;;  %3338 = vmatpush3.msra.mxu1 %v3918_v34 }
 0x420   :  { %3339 = vmatprep.subr.mxu1 %v3566_v1 }
 0x421   :  { %3340 = vmatpush3.msra.mxu1 %v3926_v36 }
 0x422   :  { %3315 = vmatmul.mubr.msk.f32.gmra.mxu1 %vm1333_vm12, %v1331_v29  ;;  %3341 = vmatprep.subr.mxu1 %v3566_v1 }
 0x423   :  { %3317 = vmatprep.mubr.msk.f32.mxu1 %vm3567_vm0, %v3566_v1  ;;  %3342 = vmatpush3.msra.mxu1 %v3930_v37 }
 0x424   :  { %3343 = vmatprep.subr.mxu1 %v3566_v1 }
 0x425   :  { %3344 = vmatpush3.msra.mxu1 %v3933_v38 }
 0x426   :  { %3318 = vmatmul.mubr.msk.f32.gmra.mxu1 %vm1333_vm12, %v1332_v30  ;;  %3371 = vmatprep.subr.mxu1 %v3566_v1 }
 0x427   :  { %3345 = vmatprep.mubr.msk.f32.mxu1 %vm3567_vm0, %v3566_v1 }
 0x4de   :  { %v3940_v39 = vpop.f32.mrf.mxu1 }
 0x4df   :  { %v1426_v40 = vmax.f32 %v3940_v39, 0.0 }
 0x4e0   :  { %v3313_v41 = vpop.f32.mrf.mxu1 }
 0x4e1   :  { %1429 = vst.msk [vmem:[#allocation2] sm:$0xff] %vm224_vm8, %v1426_v40 }
 0x4e2   :  { %v3944_v42 = vpop.f32.mrf.mxu1 }
 0x4e3   :  { %v1427_v43 = vmax.f32 %v3944_v42, 0.0 }
 0x4e4   :  { %v3316_v44 = vpop.f32.mrf.mxu1 }
 0x4e5   :  { %1430 = vst.msk [vmem:[#allocation2 + $0x8] sm:$0xff] %vm224_vm8, %v1427_v43 }
 0x4e6   :  { %v3948_v45 = vpop.f32.mrf.mxu1 }
 0x4e7   :  { %v1428_v46 = vmax.f32 %v3948_v45, 0.0 }
 0x4e8   :  { %v1432_v48 = vld [vmem:[#allocation2] sm:$0xff]  ;;  %v3319_v49 = vpop.f32.mrf.mxu1 }
 0x4e9   :  { %1431 = vst.msk [vmem:[#allocation2 + $0x10] sm:$0xf] %vm229_vm9, %v1428_v46  ;;  %3329 = vmatmul.mubr.msk.f32.vlgmr.msra.gmra.mxu0 %vm224_vm8, %v1432_v48 }
 0x4ea   :  { %3331 = vmatprep.mubr.msk.f32.mxu0 %vm3567_vm0, %v3566_v1  ;;  %3355 = vmatpush3.msra.mxu0 %v3951_v47 }
 0x4eb   :  { %3356 = vmatprep.subr.mxu0 %v3566_v1 }
 0x4ec   :  { %v1433_v51 = vld [vmem:[#allocation2 + $0x8] sm:$0xff]  ;;  %3357 = vmatpush3.msra.mxu0 %v3955_v50 }
 0x4ed   :  { %v1531_v52 = vld [vmem:[#allocation2 + $0x1] sm:$0xff]  ;;  %3332 = vmatmul.mubr.msk.f32.gmra.mxu0 %vm224_vm8, %v1433_v51  ;;  %3358 = vmatprep.subr.mxu0 %v3566_v1 }
 0x4ee   :  { %3346 = vmatmul.mubr.msk.f32.vlgmr.msra.gmra.mxu1 %vm224_vm8, %v1531_v52  ;;  %3334 = vmatprep.mubr.msk.f32.mxu0 %vm3567_vm0, %v3566_v1  ;;  %v1626_v59 = vld [vmem:[#allocation2 + $0x2] sm:$0xff] }
 0x4ef   :  { %3348 = vmatprep.mubr.msk.f32.mxu1 %vm3567_vm0, %v3566_v1  ;;  %3372 = vmatpush3.msra.mxu1 %v3908_v31  ;;  %v2050_v52 = vld [vmem:[#allocation3 + $0x178] sm:$0xff] }
 0x4f0   :  { %v1434_v55 = vld [vmem:[#allocation2 + $0x10] sm:$0x3]  ;;  %3359 = vmatpush3.msra.mxu0 %v3964_v54  ;;  %3373 = vmatprep.subr.mxu1 %v3566_v1  ;;  %v1628_v61 = vld [vmem:[#allocation2 + $0x12] sm:$0x3] }
 0x4f1   :  { %v1532_v56 = vld [vmem:[#allocation2 + $0x9] sm:$0xff]  ;;  %3335 = vmatmul.mubr.msk.f32.gmra.mxu0 %vm224_vm8, %v1434_v55  ;;  %3360 = vmatprep.subr.mxu0 %v3566_v1  ;;  %v1533_v58 = vld [vmem:[#allocation2 + $0x11] sm:$0x3] }
 0x4f2   :  { %3349 = vmatmul.mubr.msk.f32.gmra.mxu1 %vm224_vm8, %v1532_v56  ;;  %3361 = vmatpush3.msra.mxu0 %v3973_v57  ;;  %v1627_v60 = vld [vmem:[#allocation2 + $0xa] sm:$0xff] }
 0x4f3   :  { %3351 = vmatprep.mubr.msk.f32.mxu1 %vm3567_vm0, %v3566_v1  ;;  %3362 = vmatprep.mubr.msk.f32.mxu0 %vm3567_vm0, %v3566_v1 }
 0x4f4   :  { %3388 = vmatprep.subr.mxu0 %v3566_v1  ;;  %3374 = vmatpush3.msra.mxu1 %v3912_v32 }
 0x4f5   :  { %3363 = vmatmul.mubr.msk.f32.vlgmr.msra.gmra.mxu0 %vm224_vm8, %v1626_v59  ;;  %3375 = vmatprep.subr.mxu1 %v3566_v1 }
 0x4f6   :  { %3352 = vmatmul.mubr.msk.f32.gmra.mxu1 %vm224_vm8, %v1533_v58  ;;  %3365 = vmatprep.mubr.msk.f32.mxu0 %vm3567_vm0, %v3566_v1 }
 0x4f7   :  { %3389 = vmatpush3.msra.mxu0 %v3918_v34  ;;  %3376 = vmatpush3.msra.mxu1 %v3916_v33 }
 0x4f8   :  { %3390 = vmatprep.subr.mxu0 %v3566_v1  ;;  %3377 = vmatprep.subr.mxu1 %v3566_v1 }
 0x4f9   :  { %3391 = vmatpush3.msra.mxu0 %v3926_v36  ;;  %3378 = vmatpush3.msra.mxu1 %v3924_v35 }
 0x4fa   :  { %3366 = vmatmul.mubr.msk.f32.gmra.mxu0 %vm224_vm8, %v1627_v60  ;;  %3392 = vmatprep.subr.mxu0 %v3566_v1 }
 0x4fb   :  { %3368 = vmatprep.mubr.msk.f32.mxu0 %vm3567_vm0, %v3566_v1  ;;  %3393 = vmatpush3.msra.mxu0 %v3930_v37 }
 0x4fc   :  { %3394 = vmatprep.subr.mxu0 %v3566_v1  ;;  %3379 = vmatprep.mubr.msk.f32.mxu1 %vm3567_vm0, %v3566_v1 }
 0x4fd   :  { %3405 = vmatprep.subr.mxu1 %v3566_v1  ;;  %3395 = vmatpush3.msra.mxu0 %v3933_v38 }
 0x4fe   :  { %3369 = vmatmul.mubr.msk.f32.gmra.mxu0 %vm224_vm8, %v1628_v61 }
 0x4ff   :  { %3396 = vmatprep.mubr.msk.f32.mxu0 %vm3567_vm0, %v3566_v1 }
 0x5a9   :  { %v1510_v9 = vpop.f32.mrf.mxu0 }
 0x5aa   :  { %v1528_v53 = vadd.f32 %v4010_v13, %v1510_v9 }
 0x5ab   :  { %v3330_v10 = vpop.f32.mrf.mxu0 }
 0x5ad   :  { %v1515_v11 = vpop.f32.mrf.mxu0 }
 0x5ae   :  { %v1609_v2 = vpop.f32.mrf.mxu1  ;;  %v1529_v3 = vadd.f32 %v4010_v13, %v1515_v11 }
 0x5af   :  { %v3333_v4 = vpop.f32.mrf.mxu0  ;;  %v1623_v0 = vadd.f32 %v1609_v2, %v1528_v53 }
 0x5b0   :  { %v3347_v14 = vpop.f32.mrf.mxu1 }
 0x5b1   :  { %v1520_v27 = vpop.f32.mrf.mxu0 }
 0x5b2   :  { %v1614_v6 = vpop.f32.mrf.mxu1  ;;  %v1530_v20 = vadd.f32 %v4010_v13, %v1520_v27 }
 0x5b3   :  { %v3336_v15 = vpop.f32.mrf.mxu0  ;;  %v1624_v17 = vadd.f32 %v1614_v6, %v1529_v3 }
 0x5b4   :  { %v3350_v16 = vpop.f32.mrf.mxu1 }
 0x5b5   :  { %v1704_v63 = vpop.f32.mrf.mxu0 }
 0x5b6   :  { %v1619_v62 = vpop.f32.mrf.mxu1  ;;  %v1718_v12 = vadd.f32 %v1704_v63, %v1623_v0 }
 0x5b7   :  { %v3364_v7 = vpop.f32.mrf.mxu0  ;;  %v1625_v23 = vadd.f32 %v1619_v62, %v1530_v20 }
 0x5b8   :  { %v3353_v5 = vpop.f32.mrf.mxu1  ;;  %v1721_v18 = vmax.f32 %v1718_v12, 0.0 }
 0x5ba   :  { %v1709_v19 = vpop.f32.mrf.mxu0  ;;  %1724 = vst.msk [vmem:[#allocation2 + $0x1] sm:$0xff] %vm224_vm8, %v1721_v18 }
 0x5bb   :  { %v1719_v21 = vadd.f32 %v1709_v19, %v1624_v17 }
 0x5bc   :  { %v3367_v22 = vpop.f32.mrf.mxu0 }
 0x5bd   :  { %v1722_v24 = vmax.f32 %v1719_v21, 0.0 }
 0x5be   :  { %v1714_v25 = vpop.f32.mrf.mxu0 }
 0x5bf   :  { %1725 = vst.msk [vmem:[#allocation2 + $0x9] sm:$0xff] %vm224_vm8, %v1722_v24  ;;  %v1720_v26 = vadd.f32 %v1714_v25, %v1625_v23 }
 0x5c0   :  { %1727 = vst.msk [vmem:[#allocation2 + $0x9] sm:$0x3] %vm589_vm10, %v3566_v1  ;;  %v3370_v28 = vpop.f32.mrf.mxu0 }
 0x5c1   :  { %v1723_v29 = vmax.f32 %v1720_v26, 0.0  ;;  %v1728_v30 = vld [vmem:[#allocation2] sm:$0xff] }
 0x5c2   :  { %v1823_v40 = vld [vmem:[#allocation2 + $0x1] sm:$0xff]  ;;  %3380 = vmatmul.mubr.msk.f32.vlgmr.msra.gmra.mxu1 %vm224_vm8, %v1728_v30  ;;  %2033 = vst.msk [vmem:[#allocation2] sm:$0x1] %vm1302_vm11, %v3568_v8 }
 0x5c3   :  { %1726 = vst.msk [vmem:[#allocation2 + $0x11] sm:$0x3] %vm589_vm10, %v1723_v29  ;;  %3397 = vmatmul.mubr.msk.f32.vlgmr.msra.gmra.mxu0 %vm224_vm8, %v1823_v40  ;;  %3382 = vmatprep.mubr.msk.f32.mxu1 %vm3567_vm0, %v3566_v1 }
 0x5c4   :  { %3399 = vmatprep.mubr.msk.f32.mxu0 %vm3567_vm0, %v3566_v1  ;;  %3406 = vmatpush3.msra.mxu1 %v3951_v47 }
 0x5c5   :  { %3407 = vmatprep.subr.mxu1 %v3566_v1 }
 0x5c6   :  { %3408 = vmatpush3.msra.mxu1 %v3955_v50 }
 0x5c7   :  { %v1729_v41 = vld [vmem:[#allocation2 + $0x8] sm:$0xff]  ;;  %3409 = vmatprep.subr.mxu1 %v3566_v1 }
 0x5c8   :  { %v1824_v43 = vld [vmem:[#allocation2 + $0x9] sm:$0xff]  ;;  %3383 = vmatmul.mubr.msk.f32.gmra.mxu1 %vm224_vm8, %v1729_v41 }
 0x5c9   :  { %3400 = vmatmul.mubr.msk.f32.gmra.mxu0 %vm224_vm8, %v1824_v43  ;;  %3385 = vmatprep.mubr.msk.f32.mxu1 %vm3567_vm0, %v3566_v1  ;;  %v1918_v48 = vld [vmem:[#allocation2 + $0x2] sm:$0xff] }
 0x5ca   :  { %3402 = vmatprep.mubr.msk.f32.mxu0 %vm3567_vm0, %v3566_v1  ;;  %v1730_v44 = vld [vmem:[#allocation2 + $0x10] sm:$0x3]  ;;  %3410 = vmatpush3.msra.mxu1 %v3964_v54  ;;  %v1920_v51 = vld [vmem:[#allocation2 + $0x12] sm:$0x3] }
 0x5cb   :  { %v1825_v46 = vld [vmem:[#allocation2 + $0x11] sm:$0x3]  ;;  %3411 = vmatprep.subr.mxu1 %v3566_v1 }
 0x5cc   :  { %3386 = vmatmul.mubr.msk.f32.gmra.mxu1 %vm224_vm8, %v1730_v44  ;;  %v1919_v49 = vld [vmem:[#allocation2 + $0xa] sm:$0xff] }
 0x5cd   :  { %3403 = vmatmul.mubr.msk.f32.gmra.mxu0 %vm224_vm8, %v1825_v46  ;;  %3413 = vmatprep.mubr.msk.f32.mxu1 %vm3567_vm0, %v3566_v1 }
 0x5ce   :  { %3412 = vmatpush3.msra.mxu1 %v3973_v57  ;;  %3428 = vmatprep.mubr.msk.f32.mxu0 %vm2052_vm13, %v2050_v52 }
 0x5cf   :  { %3431 = vmatprep.subr.mxu1 %v3908_v31 }
 0x5d0   :  { %3414 = vmatmul.mubr.msk.f32.vlgmr.msra.gmra.mxu1 %vm224_vm8, %v1918_v48 }
 0x5d1   :  { %3416 = vmatprep.mubr.msk.f32.mxu1 %vm3567_vm0, %v3566_v1  ;;  %3432 = vmatpush3.msra.mxu1 %v3908_v31 }
 0x5d2   :  { %3433 = vmatprep.subr.mxu1 %v3912_v32 }
 0x5d3   :  { %3434 = vmatpush3.msra.mxu1 %v3912_v32 }
 0x5d4   :  { %3417 = vmatmul.mubr.msk.f32.gmra.mxu1 %vm224_vm8, %v1919_v49  ;;  %3435 = vmatprep.subr.mxu1 %v3916_v33 }
 0x5d5   :  { %3419 = vmatprep.mubr.msk.f32.mxu1 %vm3567_vm0, %v3566_v1  ;;  %3436 = vmatpush3.msra.mxu1 %v3916_v33 }
 0x5d6   :  { %3437 = vmatprep.subr.mxu1 %v3924_v35 }
 0x5d7   :  { %3438 = vmatpush3.msra.mxu1 %v3924_v35 }
 0x5d8   :  { %3420 = vmatmul.mubr.msk.f32.gmra.mxu1 %vm224_vm8, %v1920_v51  ;;  %3453 = vmatprep.subr.mxu1 %v3951_v47 }
 0x682   :  { %v1806_v55 = vpop.f32.mrf.mxu1 }
 0x683   :  { %v1901_v56 = vpop.f32.mrf.mxu0  ;;  %v1820_v11 = vadd.f32 %v4010_v13, %v1806_v55  ;;  %v2051_v55 = vld [vmem:[#allocation3 + $0x180] sm:$0xf] }
 0x684   :  { %v3381_v58 = vpop.f32.mrf.mxu1 }
 0x685   :  { %v3398_v59 = vpop.f32.mrf.mxu0  ;;  %v1915_v6 = vadd.f32 %v1901_v56, %v1820_v11 }
 0x688   :  { %v1811_v60 = vpop.f32.mrf.mxu1 }
 0x689   :  { %v1906_v61 = vpop.f32.mrf.mxu0  ;;  %v1821_v53 = vadd.f32 %v4010_v13, %v1811_v60 }
 0x68a   :  { %v3384_v9 = vpop.f32.mrf.mxu1 }
 0x68b   :  { %v3401_v10 = vpop.f32.mrf.mxu0  ;;  %v1916_v62 = vadd.f32 %v1906_v61, %v1821_v53 }
 0x68c   :  { %v1816_v2 = vpop.f32.mrf.mxu1 }
 0x68d   :  { %v1911_v4 = vpop.f32.mrf.mxu0  ;;  %v1822_v63 = vadd.f32 %v4010_v13, %v1816_v2 }
 0x68e   :  { %v3387_v14 = vpop.f32.mrf.mxu1 }
 0x68f   :  { %v3404_v27 = vpop.f32.mrf.mxu0  ;;  %v1917_v18 = vadd.f32 %v1911_v4, %v1822_v63 }
 0x690   :  { %v1996_v15 = vpop.f32.mrf.mxu1 }
 0x691   :  { %v2010_v16 = vadd.f32 %v1996_v15, %v1915_v6 }
 0x692   :  { %v3415_v0 = vpop.f32.mrf.mxu1 }
 0x693   :  { %v2017_v3 = vrot.slane %v2010_v16, 7 }
 0x694   :  { %v2001_v12 = vpop.f32.mrf.mxu1 }
 0x695   :  { %v2025_v5 = vadd.f32 %v2017_v3, %v3940_v39  ;;  %v2011_v7 = vadd.f32 %v2001_v12, %v1916_v62 }
 0x696   :  { %v3418_v17 = vpop.f32.mrf.mxu1 }
 0x697   :  { %v2018_v19 = vrot.slane %v2011_v7, 7  ;;  %2029 = vst.msk [vmem:[#allocation2] sm:$0xfe] %vm2028_vm14, %v2025_v5  ;;  %v67_v7 = vld [vmem:[#allocation3 + $0x148] sm:$0xff]  ;;  %v66_v17 = vld [vmem:[#allocation3 + $0x140] sm:$0xff] }
 0x698   :  { %v2006_v20 = vpop.f32.mrf.mxu1 }
 0x699   :  { %v2019_v21 = vsel %vm2016_vm15, %v2017_v3, %v2018_v19  ;;  %v2012_v22 = vadd.f32 %v2006_v20, %v1917_v18 }
 0x69a   :  { %v2026_v23 = vadd.f32 %v2019_v21, %v3944_v42  ;;  %v3421_v24 = vpop.f32.mrf.mxu1 }
 0x69b   :  { %v2020_v25 = vrot.slane %v2012_v22, 7 }
 0x69c   :  { %2030 = vst.msk [vmem:[#allocation2 + $0x8] sm:$0xff] %vm224_vm8, %v2026_v23 }
 0x69d   :  { %2034 = vst.msk [vmem:[#allocation2 + $0xa] sm:$0x1] %vm1302_vm11, %v3568_v8  ;;  %v2021_v39 = vsel %vm2016_vm15, %v2018_v19, %v2020_v25 }
 0x69e   :  { %v2027_v26 = vadd.f32 %v2021_v39, %v3948_v45  ;;  %v2035_v46 = vld [vmem:[#allocation2] sm:$0xff] }
 0x6a0   :  { %2032 = vst.msk [vmem:[#allocation2 + $0x10] sm:$0x7] %vm2031_vm2, %v2027_v26 }
 0x6a3   :  { %v2038_v30 = vld [vmem:[#allocation2 + $0x1] sm:$0xff] }
 0x6a4   :  { %v2036_v41 = vld [vmem:[#allocation2 + $0x8] sm:$0xff]  ;;  %v2044_v49 = vmax.f32 %v2035_v46, %v2038_v30 }
 0x6a5   :  { %v2041_v45 = vld [vmem:[#allocation2 + $0x2] sm:$0xff] }
 0x6a6   :  { %v2047_v52 = vmax.f32 %v2044_v49, %v2041_v45 }
 0x6a7   :  { %v2037_v28 = vld [vmem:[#allocation2 + $0x10] sm:$0x3]  ;;  %v2043_v43 = vld [vmem:[#allocation2 + $0x12] sm:$0x3] }
 0x6a8   :  { %v2040_v29 = vld [vmem:[#allocation2 + $0x11] sm:$0x3]  ;;  %v2039_v42 = vld [vmem:[#allocation2 + $0x9] sm:$0xff] }
 0x6a9   :  { %v2046_v40 = vmax.f32 %v2037_v28, %v2040_v29  ;;  %v2045_v44 = vmax.f32 %v2036_v41, %v2039_v42  ;;  %v2042_v51 = vld [vmem:[#allocation2 + $0xa] sm:$0xff] }
 0x6ab   :  { %v2049_v48 = vmax.f32 %v2046_v40, %v2043_v43  ;;  %v2048_v8 = vmax.f32 %v2045_v44, %v2042_v51 }
 0x6ad   :  { %3422 = vmatprep.subr.msk.mxu0 %vm130_vm1, %v2049_v48 }
 0x6ae   :  { %3423 = vmatpush3.msk.msra.mxu0 %vm130_vm1, %v2049_v48  ;;  %vm2673_vm1 = vcmask 261127  }
 0x6af   :  { %3424 = vmatprep.subr.mxu0 %v2048_v8 }
 0x6b0   :  { %3425 = vmatpush3.msra.mxu0 %v2048_v8 }
 0x6b1   :  { %3426 = vmatprep.subr.mxu0 %v2047_v52 }
 0x6b2   :  { %3427 = vmatpush3.msra.mxu0 %v2047_v52 }
 0x6b3   :  { %3429 = vmatmul.mubr.msk.f32.vlgmr.msra.gmra.mxu0 %vm2052_vm13, %v2051_v55  ;;  %3442 = vmatprep.subr.mxu0 %v3918_v34 }
 0x6b4   :  { %3443 = vmatpush3.msra.mxu0 %v3918_v34 }
 0x6b5   :  { %3444 = vmatprep.subr.mxu0 %v3926_v36 }
 0x6b6   :  { %3445 = vmatpush3.msra.mxu0 %v3926_v36 }
 0x6b7   :  { %3446 = vmatprep.subr.mxu0 %v3930_v37 }
 0x6b8   :  { %3447 = vmatpush3.msra.mxu0 %v3930_v37 }
 0x6b9   :  { %3448 = vmatprep.subr.mxu0 %v3933_v38 }
 0x6ba   :  { %3449 = vmatpush3.msra.mxu0 %v3933_v38 }
 0x6bb   :  { %3464 = vmatprep.subr.mxu0 %v3908_v31 }
 0x773   :  { %v4086_v56 = vpop.f32.mrf.mxu0 }
 0x774   :  { %v2138_v58 = vmax.f32 %v4086_v56, 0.0 }
 0x775   :  { %v4089_v59 = vpop.f32.mrf.mxu0 }
 0x776   :  { %2140 = vst.msk [vmem:[#allocation2 + $0x8] sm:$0xf] %vm229_vm9, %v2138_v58  ;;  %v2137_v60 = vmax.f32 %v4089_v59, 0.0 }
 0x778   :  { %2139 = vst.msk [vmem:[#allocation2] sm:$0xff] %vm224_vm8, %v2137_v60 }
 0x77d   :  { %v2142_v10 = vld [vmem:[#allocation2 + $0x8] sm:$0x3]  ;;  %v2312_v4 = vld [vmem:[#allocation2 + $0xa] sm:$0x3] }
 0x77e   :  { %v2227_v11 = vld [vmem:[#allocation2 + $0x9] sm:$0x3] }
 0x77f   :  { %v2141_v61 = vld [vmem:[#allocation2] sm:$0xff] }
 0x780   :  { %v2226_v9 = vld [vmem:[#allocation2 + $0x1] sm:$0xff]  ;;  %3439 = vmatprep.mubr.msk.f32.mxu1 %vm224_vm8, %v2141_v61 }
 0x781   :  { %3450 = vmatprep.mubr.msk.f32.mxu0 %vm224_vm8, %v2226_v9  ;;  %3440 = vmatmul.mubr.msk.f32.vlgmr.msra.gmra.mxu1 %vm224_vm8, %v2142_v10  ;;  %v2311_v2 = vld [vmem:[#allocation2 + $0x2] sm:$0xff] }
 0x782   :  { %3451 = vmatmul.mubr.msk.f32.vlgmr.msra.gmra.mxu0 %vm224_vm8, %v2227_v11  ;;  %3454 = vmatpush3.msra.mxu1 %v3951_v47 }
 0x783   :  { %3461 = vmatprep.mubr.msk.f32.mxu1 %vm224_vm8, %v2311_v2  ;;  %3455 = vmatprep.subr.mxu1 %v3955_v50 }
 0x784   :  { %3465 = vmatpush3.msra.mxu0 %v3908_v31  ;;  %3456 = vmatpush3.msra.mxu1 %v3955_v50 }
 0x785   :  { %3466 = vmatprep.subr.mxu0 %v3912_v32  ;;  %3457 = vmatprep.subr.mxu1 %v3964_v54 }
 0x786   :  { %3467 = vmatpush3.msra.mxu0 %v3912_v32  ;;  %3458 = vmatpush3.msra.mxu1 %v3964_v54 }
 0x787   :  { %3468 = vmatprep.subr.mxu0 %v3916_v33  ;;  %3459 = vmatprep.subr.mxu1 %v3973_v57 }
 0x788   :  { %3469 = vmatpush3.msra.mxu0 %v3916_v33  ;;  %3460 = vmatpush3.msra.mxu1 %v3973_v57 }
 0x789   :  { %3470 = vmatprep.subr.mxu0 %v3924_v35  ;;  %3462 = vmatmul.mubr.msk.f32.vlgmr.msra.gmra.mxu1 %vm224_vm8, %v2312_v4 }
 0x78a   :  { %3475 = vmatprep.subr.mxu1 %v3918_v34  ;;  %3471 = vmatpush3.msra.mxu0 %v3924_v35 }
 0x78b   :  { %3476 = vmatpush3.msra.mxu1 %v3918_v34  ;;  %3486 = vmatprep.subr.mxu0 %v3951_v47 }
 0x78c   :  { %3477 = vmatprep.subr.mxu1 %v3926_v36 }
 0x78d   :  { %3478 = vmatpush3.msra.mxu1 %v3926_v36 }
 0x78e   :  { %3479 = vmatprep.subr.mxu1 %v3930_v37 }
 0x78f   :  { %3480 = vmatpush3.msra.mxu1 %v3930_v37 }
 0x790   :  { %3481 = vmatprep.subr.mxu1 %v3933_v38 }
 0x791   :  { %3482 = vmatpush3.msra.mxu1 %v3933_v38 }
 0x792   :  { %3497 = vmatprep.subr.mxu1 %v3566_v1 }
 0x841   :  { %v3441_v31 = vpop.f32.mrf.mxu1 }
 0x842   :  { %v2225_v33 = vadd.f32 %v3441_v31, %v4010_v13  ;;  %v3452_v34 = vpop.f32.mrf.mxu0 }
 0x843   :  { %v2215_v32 = vpop.f32.mrf.mxu1 }
 0x844   :  { %v2224_v35 = vadd.f32 %v4010_v13, %v2215_v32  ;;  %v2310_v14 = vadd.f32 %v3452_v34, %v2225_v33  ;;  %v2300_v27 = vpop.f32.mrf.mxu0 }
 0x846   :  { %v2309_v6 = vadd.f32 %v2300_v27, %v2224_v35 }
 0x849   :  { %v3463_v36 = vpop.f32.mrf.mxu1 }
 0x84a   :  { %v2395_v53 = vadd.f32 %v3463_v36, %v2310_v14 }
 0x84b   :  { %v2385_v15 = vpop.f32.mrf.mxu1 }
 0x84c   :  { %v2397_v37 = vmax.f32 %v2395_v53, 0.0  ;;  %v2394_v16 = vadd.f32 %v2385_v15, %v2309_v6 }
 0x84e   :  { %2399 = vst.msk [vmem:[#allocation2 + $0x9] sm:$0x3] %vm589_vm10, %v2397_v37  ;;  %v2396_v38 = vmax.f32 %v2394_v16, 0.0 }
 0x850   :  { %2398 = vst.msk [vmem:[#allocation2 + $0x1] sm:$0xff] %vm224_vm8, %v2396_v38 }
 0x851   :  { %2400 = vst.msk [vmem:[#allocation2 + $0x5] sm:$0x3] %vm589_vm10, %v3566_v1 }
 0x855   :  { %v2487_v3 = vld [vmem:[#allocation2 + $0x9] sm:$0x3] }
 0x856   :  { %v2572_v5 = vld [vmem:[#allocation2 + $0xa] sm:$0x3] }
 0x857   :  { %v2402_v63 = vld [vmem:[#allocation2 + $0x8] sm:$0x3] }
 0x858   :  { %v2401_v0 = vld [vmem:[#allocation2] sm:$0xff] }
 0x859   :  { %v2486_v62 = vld [vmem:[#allocation2 + $0x1] sm:$0xff]  ;;  %3472 = vmatprep.mubr.msk.f32.mxu0 %vm224_vm8, %v2401_v0 }
 0x85a   :  { %3483 = vmatprep.mubr.msk.f32.mxu1 %vm224_vm8, %v2486_v62  ;;  %3473 = vmatmul.mubr.msk.f32.vlgmr.msra.gmra.mxu0 %vm224_vm8, %v2402_v63  ;;  %v2571_v12 = vld [vmem:[#allocation2 + $0x2] sm:$0xff] }
 0x85b   :  { %3484 = vmatmul.mubr.msk.f32.vlgmr.msra.gmra.mxu1 %vm224_vm8, %v2487_v3  ;;  %3487 = vmatpush3.msra.mxu0 %v3951_v47  ;;  %v68_v47 = vld [vmem:[#allocation3 + $0x150] sm:$0xff] }
 0x85c   :  { %3494 = vmatprep.mubr.msk.f32.mxu0 %vm224_vm8, %v2571_v12  ;;  %3488 = vmatprep.subr.mxu0 %v3955_v50 }
 0x85d   :  { %3505 = vmatprep.mubr.msk.f32.mxu1 %vm3567_vm0, %v3566_v1  ;;  %3489 = vmatpush3.msra.mxu0 %v3955_v50  ;;  %v65_v50 = vld [vmem:[#allocation3 + $0x138] sm:$0xff]  ;;  %vm2665_vm0 = vcmask 258049  }
 0x85e   :  { %3490 = vmatprep.subr.mxu0 %v3964_v54  ;;  %3498 = vmatpush3.msra.mxu1 %v68_v47 }
 0x85f   :  { %3491 = vmatpush3.msra.mxu0 %v3964_v54  ;;  %3499 = vmatprep.subr.mxu1 %v3566_v1 }
 0x860   :  { %3492 = vmatprep.subr.mxu0 %v3973_v57  ;;  %3500 = vmatpush3.msra.mxu1 %v67_v7 }
 0x861   :  { %3493 = vmatpush3.msra.mxu0 %v3973_v57  ;;  %3501 = vmatprep.subr.mxu1 %v3566_v1 }
 0x862   :  { %3495 = vmatmul.mubr.msk.f32.vlgmr.msra.gmra.mxu0 %vm224_vm8, %v2572_v5  ;;  %3502 = vmatpush3.msra.mxu1 %v66_v17 }
 0x863   :  { %3503 = vmatprep.subr.mxu1 %v3566_v1 }
 0x864   :  { %3504 = vmatpush3.msra.mxu1 %v65_v50 }
 0x91a   :  { %v3474_v54 = vpop.f32.mrf.mxu0 }
 0x91b   :  { %v2485_v57 = vadd.f32 %v3474_v54, %v4010_v13  ;;  %v3485_v19 = vpop.f32.mrf.mxu1 }
 0x91c   :  { %v2475_v18 = vpop.f32.mrf.mxu0 }
 0x91d   :  { %v2484_v20 = vadd.f32 %v4010_v13, %v2475_v18  ;;  %v2570_v21 = vadd.f32 %v3485_v19, %v2485_v57  ;;  %v2560_v22 = vpop.f32.mrf.mxu1 }
 0x91f   :  { %v2569_v24 = vadd.f32 %v2560_v22, %v2484_v20 }
 0x922   :  { %v3496_v23 = vpop.f32.mrf.mxu0 }
 0x923   :  { %v2655_v25 = vadd.f32 %v3496_v23, %v2570_v21 }
 0x924   :  { %v2645_v39 = vpop.f32.mrf.mxu0 }
 0x925   :  { %v2654_v26 = vadd.f32 %v2645_v39, %v2569_v24  ;;  %v2659_v28 = vrot.slane %v2655_v25, 7 }
 0x927   :  { %v2658_v29 = vrot.slane %v2654_v26, 7 }
 0x929   :  { %v2660_v1 = vsel %vm2016_vm15, %v2658_v29, %v2659_v28  ;;  %v2663_v30 = vadd.f32 %v2658_v29, %v4089_v59 }
 0x92a   :  { %v2664_v40 = vadd.f32 %v4086_v56, %v2660_v1  ;;  %v2874_v56 = vld [vmem:[#allocation3 + $0x158] ss:$0 sm:$0xff] }
 0x92b   :  { %v2666_v41 = vsel %vm2665_vm0, %v2663_v30, -inf  ;;  %v2674_v42 = vsel %vm2673_vm1, %v2663_v30, -inf }
 0x92c   :  { %v2667_v13 = vrot.slane %v2666_v41, 4  ;;  %v2675_v43 = vsel %vm2031_vm2, %v2664_v40, -inf }
 0x92d   :  { %v2676_v44 = vmax.f32 %v2674_v42, %v2675_v43 }
 0x92e   :  { %v2668_v46 = vmax.f32 %v2666_v41, %v2667_v13 }
 0x92f   :  { %v2677_v48 = vrot.slane %v2676_v44, 4 }
 0x930   :  { %v2669_v49 = vrot.slane %v2668_v46, 2 }
 0x931   :  { %v2678_v51 = vmax.f32 %v2676_v44, %v2677_v48 }
 0x932   :  { %v2670_v8 = vmax.f32 %v2668_v46, %v2669_v49 }
 0x933   :  { %v2679_v45 = vrot.slane %v2678_v51, 2 }
 0x934   :  { %v2671_v52 = vrot.slane %v2670_v8, 1 }
 0x935   :  { %v2680_v55 = vmax.f32 %v2678_v51, %v2679_v45 }
 0x936   :  { %v2672_v60 = vmax.f32 %v2670_v8, %v2671_v52 }
 0x937   :  { %v2681_v58 = vrot.slane %v2680_v55, 1 }
 0x939   :  { %v2682_v61 = vmax.f32 %v2680_v55, %v2681_v58 }
 0x93b   :  { %v2683_v59 = vsel %vm2016_vm15, %v2672_v60, %v2682_v61 }
 0x93c   :  { %3506 = vmatmul.mubr.msk.f32.vlgmr.msra.gmra.mxu1 %vm224_vm8, %v2683_v59 }
 0x9fc   :  { %v2757_v9 = vpop.f32.mrf.mxu1 }
 0x9fd   :  { %v2758_v10 = vadd.f32 %v2874_v56, %v2757_v9 }
 0x9fe   :  { %v3507_v11 = vpop.f32.mrf.mxu1 }
 0x9ff   :  { %2762 = vst.msk [vmem:[#allocation6] sm:$0x3] %vm2761_vm3, %v2758_v10 }
 0xa00   :  { %3549 = shalt.err (!%p3546_p9)
}
 0xa01   :  { %2772 = dma.vmem_to_hbm [thread:$0]  %s2770_s25, 32, %s4161_s2, [#allocation5]  }
 0xa02   :  { %3560 = dma.done.wait [#allocation5], 32  }
 0xa03   :  { %3561 = vsyncadd [#allocation5], 4294967264 }
 0xa04   :  { %2776 = vsyncpa [#allocation4], 1 }
 0xa05   :  { %2777 = vsyncpa [#allocation5], 1 }

</bundles_post_ra>
